<compile_context>
chip_gen: v6e
topology: v6e:2x2x1
jax: 0.10.0
libtpu: 0.0.40
codegen_flags: <defaults>
</compile_context>

<pallas_src>
import functools
import math

import jax
import jax.numpy as jnp
from jax.experimental import pallas as pl
from jax.experimental.pallas import tpu as pltpu

HIDDEN = 32
NUM_HEADS = 4
HEAD_DIM = HIDDEN // NUM_HEADS
LN_EPS = 1e-5

# ---------------------------------------------------------------------------
# Packed-parameter layout.
#   w_slab   : (rows, 32)  — every LN / bias / (32,32) weight, 8-row aligned.
#   qkv_slab : (80, 96)    — per SA block: rows [0:32] fused [q|k|v] weight,
#                            row 32 fused bias (rows 33..39 pad); SA2 at +40.
# ---------------------------------------------------------------------------
W_LAYOUT = (
    ("sa1_ln_w", 1), ("sa1_ln_b", 1), ("sa1_out_w", HIDDEN), ("sa1_out_b", 1),
    ("sa1_ffln_w", 1), ("sa1_ffln_b", 1),
    ("sa1_ff1_w", HIDDEN), ("sa1_ff1_b", 1),
    ("sa1_ff2_w", HIDDEN), ("sa1_ff2_b", 1),
    ("w_mid", HIDDEN), ("b_mid", 1),
    ("sa2_ln_w", 1), ("sa2_ln_b", 1), ("sa2_out_w", HIDDEN), ("sa2_out_b", 1),
    ("sa2_ffln_w", 1), ("sa2_ffln_b", 1),
    ("sa2_ff1_w", HIDDEN), ("sa2_ff1_b", 1),
    ("sa2_ff2_w", HIDDEN), ("sa2_ff2_b", 1),
)

QKV_ROWS_PER_SA = 40  # 32 weight rows + 8 aligned rows holding the bias


def _build_w_layout():
    off, rows_by_name, cur = {}, {}, 0
    for name, rows in W_LAYOUT:
        off[name] = cur
        rows_by_name[name] = rows
        cur += -(-rows // 8) * 8          # 8-row (sublane) aligned entries
    return off, rows_by_name, cur


W_OFF, W_ROWS, W_TOTAL_ROWS = _build_w_layout()


# ------------------------------ kernel helpers ------------------------------
def _gelu(x):
    # tanh-approximation GELU: 1 EUP tanh + a handful of VPU ops.
    c = math.sqrt(2.0 / math.pi)
    return 0.5 * x * (1.0 + jnp.tanh(c * (x + 0.044715 * x * x * x)))


def _layernorm(x, w, b):
    mu = jnp.mean(x, axis=-1, keepdims=True)
    var = jnp.mean(x * x, axis=-1, keepdims=True) - mu * mu
    return (x - mu) * jax.lax.rsqrt(var + LN_EPS) * w + b


def _w(w_ref, name):
    # Static, sublane-aligned slice of the packed weight slab, read at use site.
    off = W_OFF[name]
    return w_ref[off:off + W_ROWS[name], :]


def _self_attention(x, w_ref, qkv_ref, prefix, sa_idx, TB, N, n_valid):
    # x: (T, D) flat tokens, T = TB * N (N is the padded sequence length)
    T, D = x.shape
    H, hd = NUM_HEADS, HEAD_DIM

    x_ln = _layernorm(x, _w(w_ref, prefix + "ln_w"), _w(w_ref, prefix + "ln_b"))

    # Fused q/k/v projection: one (T,32)@(32,96) MXU contraction + bias.
    base = sa_idx * QKV_ROWS_PER_SA
    qkv_w = qkv_ref[base:base + D, :]                    # (32, 96)
    qkv_b = qkv_ref[base + D:base + D + 1, :]            # (1, 96)
    qkv = jnp.dot(x_ln, qkv_w, preferred_element_type=jnp.float32) + qkv_b

    scale = 1.0 / math.sqrt(hd)
    if n_valid < N:                                      # static Python branch
        key_mask = jax.lax.broadcasted_iota(jnp.int32, (1, 1, N), 2) < n_valid
    else:
        key_mask = None

    # Per-head attention; static unroll over H=4 heads, each a TB-way batched
    # matmul (same MXU push count as one H*TB-batched einsum, no relayouts).
    o_heads = []
    for h in range(H):
        qh = (qkv[:, h * hd:(h + 1) * hd] * scale).reshape(TB, N, hd)
        kh = qkv[:, D + h * hd: D + (h + 1) * hd].reshape(TB, N, hd)
        vh = qkv[:, 2 * D + h * hd: 2 * D + (h + 1) * hd].reshape(TB, N, hd)
        s = jnp.einsum("bqd,bkd->bqk", qh, kh,
                       preferred_element_type=jnp.float32)      # (TB, N, N)
        if key_mask is not None:
            s = jnp.where(key_mask, s, jnp.float32(-1e30))
        s = s - jnp.max(s, axis=-1, keepdims=True)
        e = jnp.exp(s)
        a = e * pl.reciprocal(jnp.sum(e, axis=-1, keepdims=True), approx=True)
        oh = jnp.einsum("bqk,bkd->bqd", a, vh,
                        preferred_element_type=jnp.float32)     # (TB, N, hd)
        o_heads.append(oh.reshape(T, hd))

    # Head-sum fused into the out-projection: lane-concat heads -> (T, 32),
    # then a single (T,32)@(32,32) contraction (K=32) instead of an (H,T,32)
    # intermediate + VPU head reduction.
    o = jnp.concatenate(o_heads, axis=-1)                        # (T, 32)
    attn = jnp.dot(o, _w(w_ref, prefix + "out_w"),
                   preferred_element_type=jnp.float32)
    attn = attn + _w(w_ref, prefix + "out_b")

    av = attn + x                                                # residual 1
    ff = _layernorm(av, _w(w_ref, prefix + "ffln_w"),
                    _w(w_ref, prefix + "ffln_b"))
    ff = jnp.dot(ff, _w(w_ref, prefix + "ff1_w"),
                 preferred_element_type=jnp.float32) + _w(w_ref, prefix + "ff1_b")
    ff = _gelu(ff)
    ff = jnp.dot(ff, _w(w_ref, prefix + "ff2_w"),
                 preferred_element_type=jnp.float32) + _w(w_ref, prefix + "ff2_b")
    return ff + av                                               # residual 2


# --------------------------------- kernel -----------------------------------
def simplefc_kernel(h0_ref, emb2_ref, w_ref, qkv_ref, out_ref, *, n_valid):
    TB, N, D = h0_ref.shape
    T = TB * N

    # Flatten the TB folded batches to (T, D) for all dense/elementwise work.
    h = h0_ref[...].reshape(T, D)                        # mlp_in + emb1 done in XLA

    h = _self_attention(h, w_ref, qkv_ref, "sa1_", 0, TB, N, n_valid)

    h = jnp.maximum(h, 0.0)                              # mlp_mid: ReLU
    h = jnp.dot(h, _w(w_ref, "w_mid"),
                preferred_element_type=jnp.float32) + _w(w_ref, "b_mid")
    h = (h.reshape(TB, N, D) + emb2_ref[...]).reshape(T, D)

    h = _self_attention(h, w_ref, qkv_ref, "sa2_", 1, TB, N, n_valid)

    # mlp_out (32->3) + node_mask stay in the XLA wrapper so the kernel
    # writeback is lane-dense (32-wide) instead of 3-wide masked stores.
    out_ref[...] = h.reshape(TB, N, D)


# -------------------------------- wrapper ------------------------------------
def _pick_tb(B, N):
    # Target ~2048 token rows per grid step (amortizes the ~600-cycle per-step
    # overhead; live set stays a few MiB).  Keep >=2 grid steps only when that
    # still leaves >=1024 rows/step (v7x megacore); on v5e/v6e the grid is a
    # serial loop, so the biggest tile wins.
    target_rows = 2048
    tb = max(1, min(B, target_rows // max(N, 1)))
    while B % tb:
        tb -= 1
    if B // tb == 1 and B % 2 == 0 and (B // 2) * N >= 1024:
        tb = B // 2
    return tb, B // tb


def simple_fc_forward(pos, t_int, node_mask, packed):
    B, N, _ = pos.shape
    D = HIDDEN

    # pos_encoding(t, D) + emb_layer{1,2} (SiLU -> Linear): tiny per-batch
    # scalar glue, left to XLA.
    half = D // 2
    inv_freq = 1.0 / (10000.0 ** (jnp.arange(0, D, 2, dtype=jnp.float32) / D))
    t_rep = jnp.repeat(t_int.astype(jnp.float32), half, axis=1)          # (B, D/2)
    t_info = jnp.concatenate(
        [jnp.sin(t_rep * inv_freq), jnp.cos(t_rep * inv_freq)], axis=-1)  # (B, D)
    emb1 = (jax.nn.silu(t_info) @ packed["emb1_w"] + packed["emb1_b"])[:, None, :]
    emb2 = (jax.nn.silu(t_info) @ packed["emb2_w"] + packed["emb2_b"])[:, None, :]

    # mlp_in (K=3 matmul) + emb1 add hoisted to XLA: the kernel gets one
    # lane-dense (B, N, 32) activation stream instead of a 3-lane pos block.
    h0 = pos.astype(jnp.float32) @ packed["w_in"] + packed["b_in"] + emb1

    # Pad N to a multiple of 8 so in-kernel reshapes are free re-tiling;
    # padded key columns are masked inside the attention softmax.
    n_pad = -(-N // 8) * 8
    if n_pad != N:
        h0 = jnp.pad(h0, ((0, 0), (0, n_pad - N), (0, 0)))

    TB, grid_len = _pick_tb(B, n_pad)

    h = pl.pallas_call(
        functools.partial(simplefc_kernel, n_valid=N),
        out_shape=jax.ShapeDtypeStruct((B, n_pad, D), jnp.float32),
        grid=(grid_len,),
        in_specs=[
            pl.BlockSpec((TB, n_pad, D), lambda b: (b, 0, 0)),     # activations
            pl.BlockSpec((TB, 1, D), lambda b: (b, 0, 0)),         # emb2
            pl.BlockSpec(packed["w_slab"].shape, lambda b: (0, 0)),
            pl.BlockSpec(packed["qkv_slab"].shape, lambda b: (0, 0)),
        ],
        out_specs=pl.BlockSpec((TB, n_pad, D), lambda b: (b, 0, 0)),
        compiler_params=pltpu.CompilerParams(
            dimension_semantics=("parallel",),
            vmem_limit_bytes=48 * 1024 * 1024),
    )(h0, emb2, packed["w_slab"], packed["qkv_slab"])

    if n_pad != N:
        h = h[:, :N, :]

    # mlp_out: ReLU -> Linear(32 -> 3), then node_mask multiply (XLA fuses).
    out = jnp.maximum(h, 0.0) @ packed["w_out"] + packed["b_out"]
    out = out * node_mask.astype(jnp.float32)[:, :, None]
    return out


# --------------------------- deterministic params ----------------------------
def _linear_params(key, fan_in, fan_out):
    k1, k2 = jax.random.split(key)
    bound = 1.0 / math.sqrt(fan_in)
    w = jax.random.uniform(k1, (fan_in, fan_out), jnp.float32, -bound, bound)
    b = jax.random.uniform(k2, (1, fan_out), jnp.float32, -bound, bound)
    return w, b


def _make_sa_params(key, prefix, params):
    D = HIDDEN
    ks = jax.random.split(key, 6)
    params[prefix + "ln_w"] = jnp.ones((1, D), jnp.float32)
    params[prefix + "ln_b"] = jnp.zeros((1, D), jnp.float32)
    for i, nm in enumerate(("q", "k", "v")):
        w, b = _linear_params(ks[i], D, D)
        params[prefix + nm + "_w"] = w
        params[prefix + nm + "_b"] = jnp.zeros_like(b)   # PyTorch MHA: zero init
    w, b = _linear_params(ks[3], D, D)
    params[prefix + "out_w"], params[prefix + "out_b"] = w, jnp.zeros_like(b)
    params[prefix + "ffln_w"] = jnp.ones((1, D), jnp.float32)
    params[prefix + "ffln_b"] = jnp.zeros((1, D), jnp.float32)
    w, b = _linear_params(ks[4], D, D)
    params[prefix + "ff1_w"], params[prefix + "ff1_b"] = w, b
    w, b = _linear_params(ks[5], D, D)
    params[prefix + "ff2_w"], params[prefix + "ff2_b"] = w, b


def init_params(key):
    D = HIDDEN
    ks = jax.random.split(key, 8)
    params = {}
    params["w_in"], params["b_in"] = _linear_params(ks[0], 3, D)
    _make_sa_params(ks[1], "sa1_", params)
    params["w_mid"], params["b_mid"] = _linear_params(ks[2], D, D)
    _make_sa_params(ks[3], "sa2_", params)
    params["w_out"], params["b_out"] = _linear_params(ks[4], D, 3)
    params["emb1_w"], params["emb1_b"] = _linear_params(ks[5], D, D)
    params["emb2_w"], params["emb2_b"] = _linear_params(ks[6], D, D)
    return params


def pack_params(params):
    """Host-side packing: one (rows, 32) slab + one (80, 96) fused qkv slab."""
    D = HIDDEN
    slab = jnp.zeros((W_TOTAL_ROWS, D), jnp.float32)
    for name, rows in W_LAYOUT:
        slab = slab.at[W_OFF[name]:W_OFF[name] + rows, :].set(
            params[name].reshape(rows, D))

    def qkv_block(prefix):
        w = jnp.concatenate([params[prefix + "q_w"], params[prefix + "k_w"],
                             params[prefix + "v_w"]], axis=1)          # (32, 96)
        b = jnp.concatenate([params[prefix + "q_b"], params[prefix + "k_b"],
                             params[prefix + "v_b"]], axis=1)          # (1, 96)
        blk = jnp.zeros((QKV_ROWS_PER_SA, 3 * D), jnp.float32)
        blk = blk.at[:D, :].set(w)
        blk = blk.at[D:D + 1, :].set(b)
        return blk

    qkv_slab = jnp.concatenate([qkv_block("sa1_"), qkv_block("sa2_")], axis=0)

    return {
        "w_slab": slab,                                   # (W_TOTAL_ROWS, 32)
        "qkv_slab": qkv_slab,                             # (80, 96)
        "w_in": params["w_in"], "b_in": params["b_in"],
        "w_out": params["w_out"], "b_out": params["b_out"],
        "emb1_w": params["emb1_w"], "emb1_b": params["emb1_b"],
        "emb2_w": params["emb2_w"], "emb2_b": params["emb2_b"],
    }


if __name__ == "__main__":
    key = jax.random.PRNGKey(0)
    kp, kx, km = jax.random.split(key, 3)
    params = init_params(kp)
    packed = pack_params(params)

    B, N = 2, 8
    pos = jax.random.normal(kx, (B, N, 3), jnp.float32)
    t_int = jnp.array([[3.0], [11.0]], jnp.float32)
    node_mask = (jax.random.uniform(km, (B, N)) > 0.2).astype(jnp.float32)

    fwd = jax.jit(simple_fc_forward)
    out = fwd(pos, t_int, node_mask, packed)
    jax.block_until_ready(out)
    assert out.shape == (B, N, 3)
    print("KERNEL_OK")
</pallas_src>

<mosaic_0001>
module attributes {stable_mosaic.version = 11 : i64} {
  func.func @simplefc_kernel(%arg0: i32, %arg1: memref<2x8x32xf32, #tpu.memory_space<vmem>>, %arg2: memref<2x1x32xf32, #tpu.memory_space<vmem>>, %arg3: memref<344x32xf32, #tpu.memory_space<vmem>>, %arg4: memref<80x96xf32, #tpu.memory_space<vmem>>, %arg5: memref<2x8x32xf32, #tpu.memory_space<vmem>>) attributes {dimension_semantics = [#tpu.dimension_semantics<parallel>], iteration_bounds = array<i64: 1>, scalar_prefetch = 0 : i64, scratch_operands = 0 : i64, tpu.core_type = #tpu.core_type<tc>, window_params = [{transform_indices = @transform_0, window_bounds = array<i64: 2, 8, 32>}, {transform_indices = @transform_1, window_bounds = array<i64: 2, 1, 32>}, {pipeline_mode = #tpu.pipeline_mode<synchronous>, transform_indices = @transform_2, window_bounds = array<i64: 344, 32>}, {pipeline_mode = #tpu.pipeline_mode<synchronous>, transform_indices = @transform_3, window_bounds = array<i64: 80, 96>}, {transform_indices = @transform_4, window_bounds = array<i64: 2, 8, 32>}]} {
    %c0 = arith.constant 0 : index
    %c0_0 = arith.constant 0 : index
    %c0_1 = arith.constant 0 : index
    %0 = vector.load %arg1[%c0, %c0_0, %c0_1] : memref<2x8x32xf32, #tpu.memory_space<vmem>>, vector<2x8x32xf32>
    %1 = vector.shape_cast %0 : vector<2x8x32xf32> to vector<16x32xf32>
    %c0_2 = arith.constant 0 : index
    %c0_3 = arith.constant 0 : index
    %2 = vector.load %arg3[%c0_2, %c0_3] : memref<344x32xf32, #tpu.memory_space<vmem>>, vector<1x32xf32>
    %c8 = arith.constant 8 : index
    %c0_4 = arith.constant 0 : index
    %3 = vector.load %arg3[%c8, %c0_4] : memref<344x32xf32, #tpu.memory_space<vmem>>, vector<1x32xf32>
    %cst = arith.constant dense<0.000000e+00> : vector<16xf32>
    %4 = vector.multi_reduction <add>, %1, %cst [1] : vector<16x32xf32> to vector<16xf32>
    %5 = vector.shape_cast %4 : vector<16xf32> to vector<16x1xf32>
    %cst_5 = arith.constant 3.200000e+01 : f32
    %6 = vector.broadcast %cst_5 : f32 to vector<16x1xf32>
    %7 = arith.divf %5, %6 : vector<16x1xf32>
    %8 = arith.mulf %1, %1 : vector<16x32xf32>
    %cst_6 = arith.constant dense<0.000000e+00> : vector<16xf32>
    %9 = vector.multi_reduction <add>, %8, %cst_6 [1] : vector<16x32xf32> to vector<16xf32>
    %10 = vector.shape_cast %9 : vector<16xf32> to vector<16x1xf32>
    %cst_7 = arith.constant 3.200000e+01 : f32
    %11 = vector.broadcast %cst_7 : f32 to vector<16x1xf32>
    %12 = arith.divf %10, %11 : vector<16x1xf32>
    %13 = arith.mulf %7, %7 : vector<16x1xf32>
    %14 = arith.subf %12, %13 : vector<16x1xf32>
    %15 = vector.broadcast %7 : vector<16x1xf32> to vector<16x32xf32>
    %16 = arith.subf %1, %15 : vector<16x32xf32>
    %cst_8 = arith.constant 9.99999974E-6 : f32
    %17 = vector.broadcast %cst_8 : f32 to vector<16x1xf32>
    %18 = arith.addf %14, %17 : vector<16x1xf32>
    %19 = math.rsqrt %18 : vector<16x1xf32>
    %20 = vector.broadcast %19 : vector<16x1xf32> to vector<16x32xf32>
    %21 = arith.mulf %16, %20 : vector<16x32xf32>
    %22 = vector.broadcast %2 : vector<1x32xf32> to vector<16x32xf32>
    %23 = arith.mulf %21, %22 : vector<16x32xf32>
    %24 = vector.broadcast %3 : vector<1x32xf32> to vector<16x32xf32>
    %25 = arith.addf %23, %24 : vector<16x32xf32>
    %c0_9 = arith.constant 0 : index
    %c0_10 = arith.constant 0 : index
    %26 = vector.load %arg4[%c0_9, %c0_10] : memref<80x96xf32, #tpu.memory_space<vmem>>, vector<32x96xf32>
    %c32 = arith.constant 32 : index
    %c0_11 = arith.constant 0 : index
    %27 = vector.load %arg4[%c32, %c0_11] : memref<80x96xf32, #tpu.memory_space<vmem>>, vector<1x96xf32>
    %cst_12 = arith.constant dense<0.000000e+00> : vector<16x96xf32>
    %28 = tpu.matmul %25, %26, %cst_12 {dimension_numbers = #tpu.dot_dimension_numbers<[1], [0], [0], [1], [0, 0, 1, 1], [], []>} : vector<16x32xf32>, vector<32x96xf32>, vector<16x96xf32> -> vector<16x96xf32>
    %29 = vector.broadcast %27 : vector<1x96xf32> to vector<16x96xf32>
    %30 = arith.addf %28, %29 : vector<16x96xf32>
    %31 = vector.extract_strided_slice %30 {offsets = [0, 0], sizes = [16, 8], strides = [1, 1]} : vector<16x96xf32> to vector<16x8xf32>
    %cst_13 = arith.constant 0.353553385 : f32
    %32 = vector.broadcast %cst_13 : f32 to vector<16x8xf32>
    %33 = arith.mulf %31, %32 : vector<16x8xf32>
    %34 = vector.shape_cast %33 : vector<16x8xf32> to vector<2x8x8xf32>
    %35 = vector.extract_strided_slice %30 {offsets = [0, 32], sizes = [16, 8], strides = [1, 1]} : vector<16x96xf32> to vector<16x8xf32>
    %36 = vector.shape_cast %35 : vector<16x8xf32> to vector<2x8x8xf32>
    %37 = vector.extract_strided_slice %30 {offsets = [0, 64], sizes = [16, 8], strides = [1, 1]} : vector<16x96xf32> to vector<16x8xf32>
    %38 = vector.shape_cast %37 : vector<16x8xf32> to vector<2x8x8xf32>
    "tpu.trace_start"() <{level = 10 : i32, message = "bqd,bkd->bqk"}> : () -> ()
    %cst_14 = arith.constant dense<0.000000e+00> : vector<2x8x8xf32>
    %39 = tpu.matmul %34, %36, %cst_14 {dimension_numbers = #tpu.dot_dimension_numbers<[2], [2], [1], [1], [0, 0, 0, 1, 1, 1], [0], [0]>} : vector<2x8x8xf32>, vector<2x8x8xf32>, vector<2x8x8xf32> -> vector<2x8x8xf32>
    "tpu.trace_stop"() : () -> ()
    %cst_15 = arith.constant dense<0xFF800000> : vector<2x8xf32>
    %40 = vector.multi_reduction <maximumf>, %39, %cst_15 [2] : vector<2x8x8xf32> to vector<2x8xf32>
    %41 = vector.shape_cast %40 : vector<2x8xf32> to vector<2x8x1xf32>
    %42 = vector.broadcast %41 : vector<2x8x1xf32> to vector<2x8x8xf32>
    %43 = arith.subf %39, %42 : vector<2x8x8xf32>
    %44 = math.exp %43 : vector<2x8x8xf32>
    %cst_16 = arith.constant dense<0.000000e+00> : vector<2x8xf32>
    %45 = vector.multi_reduction <add>, %44, %cst_16 [2] : vector<2x8x8xf32> to vector<2x8xf32>
    %46 = vector.shape_cast %45 : vector<2x8xf32> to vector<2x8x1xf32>
    %47 = tpu.reciprocal %46 {approx = true} : vector<2x8x1xf32> -> vector<2x8x1xf32>
    %48 = vector.broadcast %47 : vector<2x8x1xf32> to vector<2x8x8xf32>
    %49 = arith.mulf %44, %48 : vector<2x8x8xf32>
    "tpu.trace_start"() <{level = 10 : i32, message = "bqk,bkd->bqd"}> : () -> ()
    %cst_17 = arith.constant dense<0.000000e+00> : vector<2x8x8xf32>
    %50 = tpu.matmul %49, %38, %cst_17 {dimension_numbers = #tpu.dot_dimension_numbers<[2], [1], [1], [2], [0, 0, 0, 1, 1, 2], [0], [0]>} : vector<2x8x8xf32>, vector<2x8x8xf32>, vector<2x8x8xf32> -> vector<2x8x8xf32>
    "tpu.trace_stop"() : () -> ()
    %51 = vector.shape_cast %50 : vector<2x8x8xf32> to vector<16x8xf32>
    %52 = vector.extract_strided_slice %30 {offsets = [0, 8], sizes = [16, 8], strides = [1, 1]} : vector<16x96xf32> to vector<16x8xf32>
    %cst_18 = arith.constant 0.353553385 : f32
    %53 = vector.broadcast %cst_18 : f32 to vector<16x8xf32>
    %54 = arith.mulf %52, %53 : vector<16x8xf32>
    %55 = vector.shape_cast %54 : vector<16x8xf32> to vector<2x8x8xf32>
    %56 = vector.extract_strided_slice %30 {offsets = [0, 40], sizes = [16, 8], strides = [1, 1]} : vector<16x96xf32> to vector<16x8xf32>
    %57 = vector.shape_cast %56 : vector<16x8xf32> to vector<2x8x8xf32>
    %58 = vector.extract_strided_slice %30 {offsets = [0, 72], sizes = [16, 8], strides = [1, 1]} : vector<16x96xf32> to vector<16x8xf32>
    %59 = vector.shape_cast %58 : vector<16x8xf32> to vector<2x8x8xf32>
    "tpu.trace_start"() <{level = 10 : i32, message = "bqd,bkd->bqk"}> : () -> ()
    %cst_19 = arith.constant dense<0.000000e+00> : vector<2x8x8xf32>
    %60 = tpu.matmul %55, %57, %cst_19 {dimension_numbers = #tpu.dot_dimension_numbers<[2], [2], [1], [1], [0, 0, 0, 1, 1, 1], [0], [0]>} : vector<2x8x8xf32>, vector<2x8x8xf32>, vector<2x8x8xf32> -> vector<2x8x8xf32>
    "tpu.trace_stop"() : () -> ()
    %cst_20 = arith.constant dense<0xFF800000> : vector<2x8xf32>
    %61 = vector.multi_reduction <maximumf>, %60, %cst_20 [2] : vector<2x8x8xf32> to vector<2x8xf32>
    %62 = vector.shape_cast %61 : vector<2x8xf32> to vector<2x8x1xf32>
    %63 = vector.broadcast %62 : vector<2x8x1xf32> to vector<2x8x8xf32>
    %64 = arith.subf %60, %63 : vector<2x8x8xf32>
    %65 = math.exp %64 : vector<2x8x8xf32>
    %cst_21 = arith.constant dense<0.000000e+00> : vector<2x8xf32>
    %66 = vector.multi_reduction <add>, %65, %cst_21 [2] : vector<2x8x8xf32> to vector<2x8xf32>
    %67 = vector.shape_cast %66 : vector<2x8xf32> to vector<2x8x1xf32>
    %68 = tpu.reciprocal %67 {approx = true} : vector<2x8x1xf32> -> vector<2x8x1xf32>
    %69 = vector.broadcast %68 : vector<2x8x1xf32> to vector<2x8x8xf32>
    %70 = arith.mulf %65, %69 : vector<2x8x8xf32>
    "tpu.trace_start"() <{level = 10 : i32, message = "bqk,bkd->bqd"}> : () -> ()
    %cst_22 = arith.constant dense<0.000000e+00> : vector<2x8x8xf32>
    %71 = tpu.matmul %70, %59, %cst_22 {dimension_numbers = #tpu.dot_dimension_numbers<[2], [1], [1], [2], [0, 0, 0, 1, 1, 2], [0], [0]>} : vector<2x8x8xf32>, vector<2x8x8xf32>, vector<2x8x8xf32> -> vector<2x8x8xf32>
    "tpu.trace_stop"() : () -> ()
    %72 = vector.shape_cast %71 : vector<2x8x8xf32> to vector<16x8xf32>
    %73 = vector.extract_strided_slice %30 {offsets = [0, 16], sizes = [16, 8], strides = [1, 1]} : vector<16x96xf32> to vector<16x8xf32>
    %cst_23 = arith.constant 0.353553385 : f32
    %74 = vector.broadcast %cst_23 : f32 to vector<16x8xf32>
    %75 = arith.mulf %73, %74 : vector<16x8xf32>
    %76 = vector.shape_cast %75 : vector<16x8xf32> to vector<2x8x8xf32>
    %77 = vector.extract_strided_slice %30 {offsets = [0, 48], sizes = [16, 8], strides = [1, 1]} : vector<16x96xf32> to vector<16x8xf32>
    %78 = vector.shape_cast %77 : vector<16x8xf32> to vector<2x8x8xf32>
    %79 = vector.extract_strided_slice %30 {offsets = [0, 80], sizes = [16, 8], strides = [1, 1]} : vector<16x96xf32> to vector<16x8xf32>
    %80 = vector.shape_cast %79 : vector<16x8xf32> to vector<2x8x8xf32>
    "tpu.trace_start"() <{level = 10 : i32, message = "bqd,bkd->bqk"}> : () -> ()
    %cst_24 = arith.constant dense<0.000000e+00> : vector<2x8x8xf32>
    %81 = tpu.matmul %76, %78, %cst_24 {dimension_numbers = #tpu.dot_dimension_numbers<[2], [2], [1], [1], [0, 0, 0, 1, 1, 1], [0], [0]>} : vector<2x8x8xf32>, vector<2x8x8xf32>, vector<2x8x8xf32> -> vector<2x8x8xf32>
    "tpu.trace_stop"() : () -> ()
    %cst_25 = arith.constant dense<0xFF800000> : vector<2x8xf32>
    %82 = vector.multi_reduction <maximumf>, %81, %cst_25 [2] : vector<2x8x8xf32> to vector<2x8xf32>
    %83 = vector.shape_cast %82 : vector<2x8xf32> to vector<2x8x1xf32>
    %84 = vector.broadcast %83 : vector<2x8x1xf32> to vector<2x8x8xf32>
    %85 = arith.subf %81, %84 : vector<2x8x8xf32>
    %86 = math.exp %85 : vector<2x8x8xf32>
    %cst_26 = arith.constant dense<0.000000e+00> : vector<2x8xf32>
    %87 = vector.multi_reduction <add>, %86, %cst_26 [2] : vector<2x8x8xf32> to vector<2x8xf32>
    %88 = vector.shape_cast %87 : vector<2x8xf32> to vector<2x8x1xf32>
    %89 = tpu.reciprocal %88 {approx = true} : vector<2x8x1xf32> -> vector<2x8x1xf32>
    %90 = vector.broadcast %89 : vector<2x8x1xf32> to vector<2x8x8xf32>
    %91 = arith.mulf %86, %90 : vector<2x8x8xf32>
    "tpu.trace_start"() <{level = 10 : i32, message = "bqk,bkd->bqd"}> : () -> ()
    %cst_27 = arith.constant dense<0.000000e+00> : vector<2x8x8xf32>
    %92 = tpu.matmul %91, %80, %cst_27 {dimension_numbers = #tpu.dot_dimension_numbers<[2], [1], [1], [2], [0, 0, 0, 1, 1, 2], [0], [0]>} : vector<2x8x8xf32>, vector<2x8x8xf32>, vector<2x8x8xf32> -> vector<2x8x8xf32>
    "tpu.trace_stop"() : () -> ()
    %93 = vector.shape_cast %92 : vector<2x8x8xf32> to vector<16x8xf32>
    %94 = vector.extract_strided_slice %30 {offsets = [0, 24], sizes = [16, 8], strides = [1, 1]} : vector<16x96xf32> to vector<16x8xf32>
    %cst_28 = arith.constant 0.353553385 : f32
    %95 = vector.broadcast %cst_28 : f32 to vector<16x8xf32>
    %96 = arith.mulf %94, %95 : vector<16x8xf32>
    %97 = vector.shape_cast %96 : vector<16x8xf32> to vector<2x8x8xf32>
    %98 = vector.extract_strided_slice %30 {offsets = [0, 56], sizes = [16, 8], strides = [1, 1]} : vector<16x96xf32> to vector<16x8xf32>
    %99 = vector.shape_cast %98 : vector<16x8xf32> to vector<2x8x8xf32>
    %100 = vector.extract_strided_slice %30 {offsets = [0, 88], sizes = [16, 8], strides = [1, 1]} : vector<16x96xf32> to vector<16x8xf32>
    %101 = vector.shape_cast %100 : vector<16x8xf32> to vector<2x8x8xf32>
    "tpu.trace_start"() <{level = 10 : i32, message = "bqd,bkd->bqk"}> : () -> ()
    %cst_29 = arith.constant dense<0.000000e+00> : vector<2x8x8xf32>
    %102 = tpu.matmul %97, %99, %cst_29 {dimension_numbers = #tpu.dot_dimension_numbers<[2], [2], [1], [1], [0, 0, 0, 1, 1, 1], [0], [0]>} : vector<2x8x8xf32>, vector<2x8x8xf32>, vector<2x8x8xf32> -> vector<2x8x8xf32>
    "tpu.trace_stop"() : () -> ()
    %cst_30 = arith.constant dense<0xFF800000> : vector<2x8xf32>
    %103 = vector.multi_reduction <maximumf>, %102, %cst_30 [2] : vector<2x8x8xf32> to vector<2x8xf32>
    %104 = vector.shape_cast %103 : vector<2x8xf32> to vector<2x8x1xf32>
    %105 = vector.broadcast %104 : vector<2x8x1xf32> to vector<2x8x8xf32>
    %106 = arith.subf %102, %105 : vector<2x8x8xf32>
    %107 = math.exp %106 : vector<2x8x8xf32>
    %cst_31 = arith.constant dense<0.000000e+00> : vector<2x8xf32>
    %108 = vector.multi_reduction <add>, %107, %cst_31 [2] : vector<2x8x8xf32> to vector<2x8xf32>
    %109 = vector.shape_cast %108 : vector<2x8xf32> to vector<2x8x1xf32>
    %110 = tpu.reciprocal %109 {approx = true} : vector<2x8x1xf32> -> vector<2x8x1xf32>
    %111 = vector.broadcast %110 : vector<2x8x1xf32> to vector<2x8x8xf32>
    %112 = arith.mulf %107, %111 : vector<2x8x8xf32>
    "tpu.trace_start"() <{level = 10 : i32, message = "bqk,bkd->bqd"}> : () -> ()
    %cst_32 = arith.constant dense<0.000000e+00> : vector<2x8x8xf32>
    %113 = tpu.matmul %112, %101, %cst_32 {dimension_numbers = #tpu.dot_dimension_numbers<[2], [1], [1], [2], [0, 0, 0, 1, 1, 2], [0], [0]>} : vector<2x8x8xf32>, vector<2x8x8xf32>, vector<2x8x8xf32> -> vector<2x8x8xf32>
    "tpu.trace_stop"() : () -> ()
    %114 = vector.shape_cast %113 : vector<2x8x8xf32> to vector<16x8xf32>
    %115 = tpu.concatenate %51, %72, %93, %114 in 1 : vector<16x8xf32>, vector<16x8xf32>, vector<16x8xf32>, vector<16x8xf32> -> vector<16x32xf32>
    %c16 = arith.constant 16 : index
    %c0_33 = arith.constant 0 : index
    %116 = vector.load %arg3[%c16, %c0_33] : memref<344x32xf32, #tpu.memory_space<vmem>>, vector<32x32xf32>
    %cst_34 = arith.constant dense<0.000000e+00> : vector<16x32xf32>
    %117 = tpu.matmul %115, %116, %cst_34 {dimension_numbers = #tpu.dot_dimension_numbers<[1], [0], [0], [1], [0, 0, 1, 1], [], []>} : vector<16x32xf32>, vector<32x32xf32>, vector<16x32xf32> -> vector<16x32xf32>
    %c48 = arith.constant 48 : index
    %c0_35 = arith.constant 0 : index
    %118 = vector.load %arg3[%c48, %c0_35] : memref<344x32xf32, #tpu.memory_space<vmem>>, vector<1x32xf32>
    %119 = vector.broadcast %118 : vector<1x32xf32> to vector<16x32xf32>
    %120 = arith.addf %117, %119 : vector<16x32xf32>
    %121 = arith.addf %120, %1 : vector<16x32xf32>
    %c56 = arith.constant 56 : index
    %c0_36 = arith.constant 0 : index
    %122 = vector.load %arg3[%c56, %c0_36] : memref<344x32xf32, #tpu.memory_space<vmem>>, vector<1x32xf32>
    %c64 = arith.constant 64 : index
    %c0_37 = arith.constant 0 : index
    %123 = vector.load %arg3[%c64, %c0_37] : memref<344x32xf32, #tpu.memory_space<vmem>>, vector<1x32xf32>
    %cst_38 = arith.constant dense<0.000000e+00> : vector<16xf32>
    %124 = vector.multi_reduction <add>, %121, %cst_38 [1] : vector<16x32xf32> to vector<16xf32>
    %125 = vector.shape_cast %124 : vector<16xf32> to vector<16x1xf32>
    %cst_39 = arith.constant 3.200000e+01 : f32
    %126 = vector.broadcast %cst_39 : f32 to vector<16x1xf32>
    %127 = arith.divf %125, %126 : vector<16x1xf32>
    %128 = arith.mulf %121, %121 : vector<16x32xf32>
    %cst_40 = arith.constant dense<0.000000e+00> : vector<16xf32>
    %129 = vector.multi_reduction <add>, %128, %cst_40 [1] : vector<16x32xf32> to vector<16xf32>
    %130 = vector.shape_cast %129 : vector<16xf32> to vector<16x1xf32>
    %cst_41 = arith.constant 3.200000e+01 : f32
    %131 = vector.broadcast %cst_41 : f32 to vector<16x1xf32>
    %132 = arith.divf %130, %131 : vector<16x1xf32>
    %133 = arith.mulf %127, %127 : vector<16x1xf32>
    %134 = arith.subf %132, %133 : vector<16x1xf32>
    %135 = vector.broadcast %127 : vector<16x1xf32> to vector<16x32xf32>
    %136 = arith.subf %121, %135 : vector<16x32xf32>
    %cst_42 = arith.constant 9.99999974E-6 : f32
    %137 = vector.broadcast %cst_42 : f32 to vector<16x1xf32>
    %138 = arith.addf %134, %137 : vector<16x1xf32>
    %139 = math.rsqrt %138 : vector<16x1xf32>
    %140 = vector.broadcast %139 : vector<16x1xf32> to vector<16x32xf32>
    %141 = arith.mulf %136, %140 : vector<16x32xf32>
    %142 = vector.broadcast %122 : vector<1x32xf32> to vector<16x32xf32>
    %143 = arith.mulf %141, %142 : vector<16x32xf32>
    %144 = vector.broadcast %123 : vector<1x32xf32> to vector<16x32xf32>
    %145 = arith.addf %143, %144 : vector<16x32xf32>
    %c72 = arith.constant 72 : index
    %c0_43 = arith.constant 0 : index
    %146 = vector.load %arg3[%c72, %c0_43] : memref<344x32xf32, #tpu.memory_space<vmem>>, vector<32x32xf32>
    %cst_44 = arith.constant dense<0.000000e+00> : vector<16x32xf32>
    %147 = tpu.matmul %145, %146, %cst_44 {dimension_numbers = #tpu.dot_dimension_numbers<[1], [0], [0], [1], [0, 0, 1, 1], [], []>} : vector<16x32xf32>, vector<32x32xf32>, vector<16x32xf32> -> vector<16x32xf32>
    %c104 = arith.constant 104 : index
    %c0_45 = arith.constant 0 : index
    %148 = vector.load %arg3[%c104, %c0_45] : memref<344x32xf32, #tpu.memory_space<vmem>>, vector<1x32xf32>
    %149 = vector.broadcast %148 : vector<1x32xf32> to vector<16x32xf32>
    %150 = arith.addf %147, %149 : vector<16x32xf32>
    %cst_46 = arith.constant 5.000000e-01 : f32
    %151 = vector.broadcast %cst_46 : f32 to vector<16x32xf32>
    %152 = arith.mulf %151, %150 : vector<16x32xf32>
    %cst_47 = arith.constant 4.471500e-02 : f32
    %153 = vector.broadcast %cst_47 : f32 to vector<16x32xf32>
    %154 = arith.mulf %153, %150 : vector<16x32xf32>
    %155 = arith.mulf %154, %150 : vector<16x32xf32>
    %156 = arith.mulf %155, %150 : vector<16x32xf32>
    %157 = arith.addf %150, %156 : vector<16x32xf32>
    %cst_48 = arith.constant 0.797884583 : f32
    %158 = vector.broadcast %cst_48 : f32 to vector<16x32xf32>
    %159 = arith.mulf %158, %157 : vector<16x32xf32>
    %160 = math.tanh %159 : vector<16x32xf32>
    %cst_49 = arith.constant 1.000000e+00 : f32
    %161 = vector.broadcast %cst_49 : f32 to vector<16x32xf32>
    %162 = arith.addf %161, %160 : vector<16x32xf32>
    %163 = arith.mulf %152, %162 : vector<16x32xf32>
    %c112 = arith.constant 112 : index
    %c0_50 = arith.constant 0 : index
    %164 = vector.load %arg3[%c112, %c0_50] : memref<344x32xf32, #tpu.memory_space<vmem>>, vector<32x32xf32>
    %cst_51 = arith.constant dense<0.000000e+00> : vector<16x32xf32>
    %165 = tpu.matmul %163, %164, %cst_51 {dimension_numbers = #tpu.dot_dimension_numbers<[1], [0], [0], [1], [0, 0, 1, 1], [], []>} : vector<16x32xf32>, vector<32x32xf32>, vector<16x32xf32> -> vector<16x32xf32>
    %c144 = arith.constant 144 : index
    %c0_52 = arith.constant 0 : index
    %166 = vector.load %arg3[%c144, %c0_52] : memref<344x32xf32, #tpu.memory_space<vmem>>, vector<1x32xf32>
    %167 = vector.broadcast %166 : vector<1x32xf32> to vector<16x32xf32>
    %168 = arith.addf %165, %167 : vector<16x32xf32>
    %169 = arith.addf %168, %121 : vector<16x32xf32>
    %cst_53 = arith.constant 0.000000e+00 : f32
    %170 = vector.broadcast %cst_53 : f32 to vector<16x32xf32>
    %171 = arith.maximumf %169, %170 : vector<16x32xf32>
    %c152 = arith.constant 152 : index
    %c0_54 = arith.constant 0 : index
    %172 = vector.load %arg3[%c152, %c0_54] : memref<344x32xf32, #tpu.memory_space<vmem>>, vector<32x32xf32>
    %cst_55 = arith.constant dense<0.000000e+00> : vector<16x32xf32>
    %173 = tpu.matmul %171, %172, %cst_55 {dimension_numbers = #tpu.dot_dimension_numbers<[1], [0], [0], [1], [0, 0, 1, 1], [], []>} : vector<16x32xf32>, vector<32x32xf32>, vector<16x32xf32> -> vector<16x32xf32>
    %c184 = arith.constant 184 : index
    %c0_56 = arith.constant 0 : index
    %174 = vector.load %arg3[%c184, %c0_56] : memref<344x32xf32, #tpu.memory_space<vmem>>, vector<1x32xf32>
    %175 = vector.broadcast %174 : vector<1x32xf32> to vector<16x32xf32>
    %176 = arith.addf %173, %175 : vector<16x32xf32>
    %177 = vector.shape_cast %176 : vector<16x32xf32> to vector<2x8x32xf32>
    %c0_57 = arith.constant 0 : index
    %c0_58 = arith.constant 0 : index
    %c0_59 = arith.constant 0 : index
    %178 = vector.load %arg2[%c0_57, %c0_58, %c0_59] : memref<2x1x32xf32, #tpu.memory_space<vmem>>, vector<2x1x32xf32>
    %179 = vector.broadcast %178 : vector<2x1x32xf32> to vector<2x8x32xf32>
    %180 = arith.addf %177, %179 : vector<2x8x32xf32>
    %181 = vector.shape_cast %180 : vector<2x8x32xf32> to vector<16x32xf32>
    %c192 = arith.constant 192 : index
    %c0_60 = arith.constant 0 : index
    %182 = vector.load %arg3[%c192, %c0_60] : memref<344x32xf32, #tpu.memory_space<vmem>>, vector<1x32xf32>
    %c200 = arith.constant 200 : index
    %c0_61 = arith.constant 0 : index
    %183 = vector.load %arg3[%c200, %c0_61] : memref<344x32xf32, #tpu.memory_space<vmem>>, vector<1x32xf32>
    %cst_62 = arith.constant dense<0.000000e+00> : vector<16xf32>
    %184 = vector.multi_reduction <add>, %181, %cst_62 [1] : vector<16x32xf32> to vector<16xf32>
    %185 = vector.shape_cast %184 : vector<16xf32> to vector<16x1xf32>
    %cst_63 = arith.constant 3.200000e+01 : f32
    %186 = vector.broadcast %cst_63 : f32 to vector<16x1xf32>
    %187 = arith.divf %185, %186 : vector<16x1xf32>
    %188 = arith.mulf %181, %181 : vector<16x32xf32>
    %cst_64 = arith.constant dense<0.000000e+00> : vector<16xf32>
    %189 = vector.multi_reduction <add>, %188, %cst_64 [1] : vector<16x32xf32> to vector<16xf32>
    %190 = vector.shape_cast %189 : vector<16xf32> to vector<16x1xf32>
    %cst_65 = arith.constant 3.200000e+01 : f32
    %191 = vector.broadcast %cst_65 : f32 to vector<16x1xf32>
    %192 = arith.divf %190, %191 : vector<16x1xf32>
    %193 = arith.mulf %187, %187 : vector<16x1xf32>
    %194 = arith.subf %192, %193 : vector<16x1xf32>
    %195 = vector.broadcast %187 : vector<16x1xf32> to vector<16x32xf32>
    %196 = arith.subf %181, %195 : vector<16x32xf32>
    %cst_66 = arith.constant 9.99999974E-6 : f32
    %197 = vector.broadcast %cst_66 : f32 to vector<16x1xf32>
    %198 = arith.addf %194, %197 : vector<16x1xf32>
    %199 = math.rsqrt %198 : vector<16x1xf32>
    %200 = vector.broadcast %199 : vector<16x1xf32> to vector<16x32xf32>
    %201 = arith.mulf %196, %200 : vector<16x32xf32>
    %202 = vector.broadcast %182 : vector<1x32xf32> to vector<16x32xf32>
    %203 = arith.mulf %201, %202 : vector<16x32xf32>
    %204 = vector.broadcast %183 : vector<1x32xf32> to vector<16x32xf32>
    %205 = arith.addf %203, %204 : vector<16x32xf32>
    %c40 = arith.constant 40 : index
    %c0_67 = arith.constant 0 : index
    %206 = vector.load %arg4[%c40, %c0_67] : memref<80x96xf32, #tpu.memory_space<vmem>>, vector<32x96xf32>
    %c72_68 = arith.constant 72 : index
    %c0_69 = arith.constant 0 : index
    %207 = vector.load %arg4[%c72_68, %c0_69] : memref<80x96xf32, #tpu.memory_space<vmem>>, vector<1x96xf32>
    %cst_70 = arith.constant dense<0.000000e+00> : vector<16x96xf32>
    %208 = tpu.matmul %205, %206, %cst_70 {dimension_numbers = #tpu.dot_dimension_numbers<[1], [0], [0], [1], [0, 0, 1, 1], [], []>} : vector<16x32xf32>, vector<32x96xf32>, vector<16x96xf32> -> vector<16x96xf32>
    %209 = vector.broadcast %207 : vector<1x96xf32> to vector<16x96xf32>
    %210 = arith.addf %208, %209 : vector<16x96xf32>
    %211 = vector.extract_strided_slice %210 {offsets = [0, 0], sizes = [16, 8], strides = [1, 1]} : vector<16x96xf32> to vector<16x8xf32>
    %cst_71 = arith.constant 0.353553385 : f32
    %212 = vector.broadcast %cst_71 : f32 to vector<16x8xf32>
    %213 = arith.mulf %211, %212 : vector<16x8xf32>
    %214 = vector.shape_cast %213 : vector<16x8xf32> to vector<2x8x8xf32>
    %215 = vector.extract_strided_slice %210 {offsets = [0, 32], sizes = [16, 8], strides = [1, 1]} : vector<16x96xf32> to vector<16x8xf32>
    %216 = vector.shape_cast %215 : vector<16x8xf32> to vector<2x8x8xf32>
    %217 = vector.extract_strided_slice %210 {offsets = [0, 64], sizes = [16, 8], strides = [1, 1]} : vector<16x96xf32> to vector<16x8xf32>
    %218 = vector.shape_cast %217 : vector<16x8xf32> to vector<2x8x8xf32>
    "tpu.trace_start"() <{level = 10 : i32, message = "bqd,bkd->bqk"}> : () -> ()
    %cst_72 = arith.constant dense<0.000000e+00> : vector<2x8x8xf32>
    %219 = tpu.matmul %214, %216, %cst_72 {dimension_numbers = #tpu.dot_dimension_numbers<[2], [2], [1], [1], [0, 0, 0, 1, 1, 1], [0], [0]>} : vector<2x8x8xf32>, vector<2x8x8xf32>, vector<2x8x8xf32> -> vector<2x8x8xf32>
    "tpu.trace_stop"() : () -> ()
    %cst_73 = arith.constant dense<0xFF800000> : vector<2x8xf32>
    %220 = vector.multi_reduction <maximumf>, %219, %cst_73 [2] : vector<2x8x8xf32> to vector<2x8xf32>
    %221 = vector.shape_cast %220 : vector<2x8xf32> to vector<2x8x1xf32>
    %222 = vector.broadcast %221 : vector<2x8x1xf32> to vector<2x8x8xf32>
    %223 = arith.subf %219, %222 : vector<2x8x8xf32>
    %224 = math.exp %223 : vector<2x8x8xf32>
    %cst_74 = arith.constant dense<0.000000e+00> : vector<2x8xf32>
    %225 = vector.multi_reduction <add>, %224, %cst_74 [2] : vector<2x8x8xf32> to vector<2x8xf32>
    %226 = vector.shape_cast %225 : vector<2x8xf32> to vector<2x8x1xf32>
    %227 = tpu.reciprocal %226 {approx = true} : vector<2x8x1xf32> -> vector<2x8x1xf32>
    %228 = vector.broadcast %227 : vector<2x8x1xf32> to vector<2x8x8xf32>
    %229 = arith.mulf %224, %228 : vector<2x8x8xf32>
    "tpu.trace_start"() <{level = 10 : i32, message = "bqk,bkd->bqd"}> : () -> ()
    %cst_75 = arith.constant dense<0.000000e+00> : vector<2x8x8xf32>
    %230 = tpu.matmul %229, %218, %cst_75 {dimension_numbers = #tpu.dot_dimension_numbers<[2], [1], [1], [2], [0, 0, 0, 1, 1, 2], [0], [0]>} : vector<2x8x8xf32>, vector<2x8x8xf32>, vector<2x8x8xf32> -> vector<2x8x8xf32>
    "tpu.trace_stop"() : () -> ()
    %231 = vector.shape_cast %230 : vector<2x8x8xf32> to vector<16x8xf32>
    %232 = vector.extract_strided_slice %210 {offsets = [0, 8], sizes = [16, 8], strides = [1, 1]} : vector<16x96xf32> to vector<16x8xf32>
    %cst_76 = arith.constant 0.353553385 : f32
    %233 = vector.broadcast %cst_76 : f32 to vector<16x8xf32>
    %234 = arith.mulf %232, %233 : vector<16x8xf32>
    %235 = vector.shape_cast %234 : vector<16x8xf32> to vector<2x8x8xf32>
    %236 = vector.extract_strided_slice %210 {offsets = [0, 40], sizes = [16, 8], strides = [1, 1]} : vector<16x96xf32> to vector<16x8xf32>
    %237 = vector.shape_cast %236 : vector<16x8xf32> to vector<2x8x8xf32>
    %238 = vector.extract_strided_slice %210 {offsets = [0, 72], sizes = [16, 8], strides = [1, 1]} : vector<16x96xf32> to vector<16x8xf32>
    %239 = vector.shape_cast %238 : vector<16x8xf32> to vector<2x8x8xf32>
    "tpu.trace_start"() <{level = 10 : i32, message = "bqd,bkd->bqk"}> : () -> ()
    %cst_77 = arith.constant dense<0.000000e+00> : vector<2x8x8xf32>
    %240 = tpu.matmul %235, %237, %cst_77 {dimension_numbers = #tpu.dot_dimension_numbers<[2], [2], [1], [1], [0, 0, 0, 1, 1, 1], [0], [0]>} : vector<2x8x8xf32>, vector<2x8x8xf32>, vector<2x8x8xf32> -> vector<2x8x8xf32>
    "tpu.trace_stop"() : () -> ()
    %cst_78 = arith.constant dense<0xFF800000> : vector<2x8xf32>
    %241 = vector.multi_reduction <maximumf>, %240, %cst_78 [2] : vector<2x8x8xf32> to vector<2x8xf32>
    %242 = vector.shape_cast %241 : vector<2x8xf32> to vector<2x8x1xf32>
    %243 = vector.broadcast %242 : vector<2x8x1xf32> to vector<2x8x8xf32>
    %244 = arith.subf %240, %243 : vector<2x8x8xf32>
    %245 = math.exp %244 : vector<2x8x8xf32>
    %cst_79 = arith.constant dense<0.000000e+00> : vector<2x8xf32>
    %246 = vector.multi_reduction <add>, %245, %cst_79 [2] : vector<2x8x8xf32> to vector<2x8xf32>
    %247 = vector.shape_cast %246 : vector<2x8xf32> to vector<2x8x1xf32>
    %248 = tpu.reciprocal %247 {approx = true} : vector<2x8x1xf32> -> vector<2x8x1xf32>
    %249 = vector.broadcast %248 : vector<2x8x1xf32> to vector<2x8x8xf32>
    %250 = arith.mulf %245, %249 : vector<2x8x8xf32>
    "tpu.trace_start"() <{level = 10 : i32, message = "bqk,bkd->bqd"}> : () -> ()
    %cst_80 = arith.constant dense<0.000000e+00> : vector<2x8x8xf32>
    %251 = tpu.matmul %250, %239, %cst_80 {dimension_numbers = #tpu.dot_dimension_numbers<[2], [1], [1], [2], [0, 0, 0, 1, 1, 2], [0], [0]>} : vector<2x8x8xf32>, vector<2x8x8xf32>, vector<2x8x8xf32> -> vector<2x8x8xf32>
    "tpu.trace_stop"() : () -> ()
    %252 = vector.shape_cast %251 : vector<2x8x8xf32> to vector<16x8xf32>
    %253 = vector.extract_strided_slice %210 {offsets = [0, 16], sizes = [16, 8], strides = [1, 1]} : vector<16x96xf32> to vector<16x8xf32>
    %cst_81 = arith.constant 0.353553385 : f32
    %254 = vector.broadcast %cst_81 : f32 to vector<16x8xf32>
    %255 = arith.mulf %253, %254 : vector<16x8xf32>
    %256 = vector.shape_cast %255 : vector<16x8xf32> to vector<2x8x8xf32>
    %257 = vector.extract_strided_slice %210 {offsets = [0, 48], sizes = [16, 8], strides = [1, 1]} : vector<16x96xf32> to vector<16x8xf32>
    %258 = vector.shape_cast %257 : vector<16x8xf32> to vector<2x8x8xf32>
    %259 = vector.extract_strided_slice %210 {offsets = [0, 80], sizes = [16, 8], strides = [1, 1]} : vector<16x96xf32> to vector<16x8xf32>
    %260 = vector.shape_cast %259 : vector<16x8xf32> to vector<2x8x8xf32>
    "tpu.trace_start"() <{level = 10 : i32, message = "bqd,bkd->bqk"}> : () -> ()
    %cst_82 = arith.constant dense<0.000000e+00> : vector<2x8x8xf32>
    %261 = tpu.matmul %256, %258, %cst_82 {dimension_numbers = #tpu.dot_dimension_numbers<[2], [2], [1], [1], [0, 0, 0, 1, 1, 1], [0], [0]>} : vector<2x8x8xf32>, vector<2x8x8xf32>, vector<2x8x8xf32> -> vector<2x8x8xf32>
    "tpu.trace_stop"() : () -> ()
    %cst_83 = arith.constant dense<0xFF800000> : vector<2x8xf32>
    %262 = vector.multi_reduction <maximumf>, %261, %cst_83 [2] : vector<2x8x8xf32> to vector<2x8xf32>
    %263 = vector.shape_cast %262 : vector<2x8xf32> to vector<2x8x1xf32>
    %264 = vector.broadcast %263 : vector<2x8x1xf32> to vector<2x8x8xf32>
    %265 = arith.subf %261, %264 : vector<2x8x8xf32>
    %266 = math.exp %265 : vector<2x8x8xf32>
    %cst_84 = arith.constant dense<0.000000e+00> : vector<2x8xf32>
    %267 = vector.multi_reduction <add>, %266, %cst_84 [2] : vector<2x8x8xf32> to vector<2x8xf32>
    %268 = vector.shape_cast %267 : vector<2x8xf32> to vector<2x8x1xf32>
    %269 = tpu.reciprocal %268 {approx = true} : vector<2x8x1xf32> -> vector<2x8x1xf32>
    %270 = vector.broadcast %269 : vector<2x8x1xf32> to vector<2x8x8xf32>
    %271 = arith.mulf %266, %270 : vector<2x8x8xf32>
    "tpu.trace_start"() <{level = 10 : i32, message = "bqk,bkd->bqd"}> : () -> ()
    %cst_85 = arith.constant dense<0.000000e+00> : vector<2x8x8xf32>
    %272 = tpu.matmul %271, %260, %cst_85 {dimension_numbers = #tpu.dot_dimension_numbers<[2], [1], [1], [2], [0, 0, 0, 1, 1, 2], [0], [0]>} : vector<2x8x8xf32>, vector<2x8x8xf32>, vector<2x8x8xf32> -> vector<2x8x8xf32>
    "tpu.trace_stop"() : () -> ()
    %273 = vector.shape_cast %272 : vector<2x8x8xf32> to vector<16x8xf32>
    %274 = vector.extract_strided_slice %210 {offsets = [0, 24], sizes = [16, 8], strides = [1, 1]} : vector<16x96xf32> to vector<16x8xf32>
    %cst_86 = arith.constant 0.353553385 : f32
    %275 = vector.broadcast %cst_86 : f32 to vector<16x8xf32>
    %276 = arith.mulf %274, %275 : vector<16x8xf32>
    %277 = vector.shape_cast %276 : vector<16x8xf32> to vector<2x8x8xf32>
    %278 = vector.extract_strided_slice %210 {offsets = [0, 56], sizes = [16, 8], strides = [1, 1]} : vector<16x96xf32> to vector<16x8xf32>
    %279 = vector.shape_cast %278 : vector<16x8xf32> to vector<2x8x8xf32>
    %280 = vector.extract_strided_slice %210 {offsets = [0, 88], sizes = [16, 8], strides = [1, 1]} : vector<16x96xf32> to vector<16x8xf32>
    %281 = vector.shape_cast %280 : vector<16x8xf32> to vector<2x8x8xf32>
    "tpu.trace_start"() <{level = 10 : i32, message = "bqd,bkd->bqk"}> : () -> ()
    %cst_87 = arith.constant dense<0.000000e+00> : vector<2x8x8xf32>
    %282 = tpu.matmul %277, %279, %cst_87 {dimension_numbers = #tpu.dot_dimension_numbers<[2], [2], [1], [1], [0, 0, 0, 1, 1, 1], [0], [0]>} : vector<2x8x8xf32>, vector<2x8x8xf32>, vector<2x8x8xf32> -> vector<2x8x8xf32>
    "tpu.trace_stop"() : () -> ()
    %cst_88 = arith.constant dense<0xFF800000> : vector<2x8xf32>
    %283 = vector.multi_reduction <maximumf>, %282, %cst_88 [2] : vector<2x8x8xf32> to vector<2x8xf32>
    %284 = vector.shape_cast %283 : vector<2x8xf32> to vector<2x8x1xf32>
    %285 = vector.broadcast %284 : vector<2x8x1xf32> to vector<2x8x8xf32>
    %286 = arith.subf %282, %285 : vector<2x8x8xf32>
    %287 = math.exp %286 : vector<2x8x8xf32>
    %cst_89 = arith.constant dense<0.000000e+00> : vector<2x8xf32>
    %288 = vector.multi_reduction <add>, %287, %cst_89 [2] : vector<2x8x8xf32> to vector<2x8xf32>
    %289 = vector.shape_cast %288 : vector<2x8xf32> to vector<2x8x1xf32>
    %290 = tpu.reciprocal %289 {approx = true} : vector<2x8x1xf32> -> vector<2x8x1xf32>
    %291 = vector.broadcast %290 : vector<2x8x1xf32> to vector<2x8x8xf32>
    %292 = arith.mulf %287, %291 : vector<2x8x8xf32>
    "tpu.trace_start"() <{level = 10 : i32, message = "bqk,bkd->bqd"}> : () -> ()
    %cst_90 = arith.constant dense<0.000000e+00> : vector<2x8x8xf32>
    %293 = tpu.matmul %292, %281, %cst_90 {dimension_numbers = #tpu.dot_dimension_numbers<[2], [1], [1], [2], [0, 0, 0, 1, 1, 2], [0], [0]>} : vector<2x8x8xf32>, vector<2x8x8xf32>, vector<2x8x8xf32> -> vector<2x8x8xf32>
    "tpu.trace_stop"() : () -> ()
    %294 = vector.shape_cast %293 : vector<2x8x8xf32> to vector<16x8xf32>
    %295 = tpu.concatenate %231, %252, %273, %294 in 1 : vector<16x8xf32>, vector<16x8xf32>, vector<16x8xf32>, vector<16x8xf32> -> vector<16x32xf32>
    %c208 = arith.constant 208 : index
    %c0_91 = arith.constant 0 : index
    %296 = vector.load %arg3[%c208, %c0_91] : memref<344x32xf32, #tpu.memory_space<vmem>>, vector<32x32xf32>
    %cst_92 = arith.constant dense<0.000000e+00> : vector<16x32xf32>
    %297 = tpu.matmul %295, %296, %cst_92 {dimension_numbers = #tpu.dot_dimension_numbers<[1], [0], [0], [1], [0, 0, 1, 1], [], []>} : vector<16x32xf32>, vector<32x32xf32>, vector<16x32xf32> -> vector<16x32xf32>
    %c240 = arith.constant 240 : index
    %c0_93 = arith.constant 0 : index
    %298 = vector.load %arg3[%c240, %c0_93] : memref<344x32xf32, #tpu.memory_space<vmem>>, vector<1x32xf32>
    %299 = vector.broadcast %298 : vector<1x32xf32> to vector<16x32xf32>
    %300 = arith.addf %297, %299 : vector<16x32xf32>
    %301 = arith.addf %300, %181 : vector<16x32xf32>
    %c248 = arith.constant 248 : index
    %c0_94 = arith.constant 0 : index
    %302 = vector.load %arg3[%c248, %c0_94] : memref<344x32xf32, #tpu.memory_space<vmem>>, vector<1x32xf32>
    %c256 = arith.constant 256 : index
    %c0_95 = arith.constant 0 : index
    %303 = vector.load %arg3[%c256, %c0_95] : memref<344x32xf32, #tpu.memory_space<vmem>>, vector<1x32xf32>
    %cst_96 = arith.constant dense<0.000000e+00> : vector<16xf32>
    %304 = vector.multi_reduction <add>, %301, %cst_96 [1] : vector<16x32xf32> to vector<16xf32>
    %305 = vector.shape_cast %304 : vector<16xf32> to vector<16x1xf32>
    %cst_97 = arith.constant 3.200000e+01 : f32
    %306 = vector.broadcast %cst_97 : f32 to vector<16x1xf32>
    %307 = arith.divf %305, %306 : vector<16x1xf32>
    %308 = arith.mulf %301, %301 : vector<16x32xf32>
    %cst_98 = arith.constant dense<0.000000e+00> : vector<16xf32>
    %309 = vector.multi_reduction <add>, %308, %cst_98 [1] : vector<16x32xf32> to vector<16xf32>
    %310 = vector.shape_cast %309 : vector<16xf32> to vector<16x1xf32>
    %cst_99 = arith.constant 3.200000e+01 : f32
    %311 = vector.broadcast %cst_99 : f32 to vector<16x1xf32>
    %312 = arith.divf %310, %311 : vector<16x1xf32>
    %313 = arith.mulf %307, %307 : vector<16x1xf32>
    %314 = arith.subf %312, %313 : vector<16x1xf32>
    %315 = vector.broadcast %307 : vector<16x1xf32> to vector<16x32xf32>
    %316 = arith.subf %301, %315 : vector<16x32xf32>
    %cst_100 = arith.constant 9.99999974E-6 : f32
    %317 = vector.broadcast %cst_100 : f32 to vector<16x1xf32>
    %318 = arith.addf %314, %317 : vector<16x1xf32>
    %319 = math.rsqrt %318 : vector<16x1xf32>
    %320 = vector.broadcast %319 : vector<16x1xf32> to vector<16x32xf32>
    %321 = arith.mulf %316, %320 : vector<16x32xf32>
    %322 = vector.broadcast %302 : vector<1x32xf32> to vector<16x32xf32>
    %323 = arith.mulf %321, %322 : vector<16x32xf32>
    %324 = vector.broadcast %303 : vector<1x32xf32> to vector<16x32xf32>
    %325 = arith.addf %323, %324 : vector<16x32xf32>
    %c264 = arith.constant 264 : index
    %c0_101 = arith.constant 0 : index
    %326 = vector.load %arg3[%c264, %c0_101] : memref<344x32xf32, #tpu.memory_space<vmem>>, vector<32x32xf32>
    %cst_102 = arith.constant dense<0.000000e+00> : vector<16x32xf32>
    %327 = tpu.matmul %325, %326, %cst_102 {dimension_numbers = #tpu.dot_dimension_numbers<[1], [0], [0], [1], [0, 0, 1, 1], [], []>} : vector<16x32xf32>, vector<32x32xf32>, vector<16x32xf32> -> vector<16x32xf32>
    %c296 = arith.constant 296 : index
    %c0_103 = arith.constant 0 : index
    %328 = vector.load %arg3[%c296, %c0_103] : memref<344x32xf32, #tpu.memory_space<vmem>>, vector<1x32xf32>
    %329 = vector.broadcast %328 : vector<1x32xf32> to vector<16x32xf32>
    %330 = arith.addf %327, %329 : vector<16x32xf32>
    %cst_104 = arith.constant 5.000000e-01 : f32
    %331 = vector.broadcast %cst_104 : f32 to vector<16x32xf32>
    %332 = arith.mulf %331, %330 : vector<16x32xf32>
    %cst_105 = arith.constant 4.471500e-02 : f32
    %333 = vector.broadcast %cst_105 : f32 to vector<16x32xf32>
    %334 = arith.mulf %333, %330 : vector<16x32xf32>
    %335 = arith.mulf %334, %330 : vector<16x32xf32>
    %336 = arith.mulf %335, %330 : vector<16x32xf32>
    %337 = arith.addf %330, %336 : vector<16x32xf32>
    %cst_106 = arith.constant 0.797884583 : f32
    %338 = vector.broadcast %cst_106 : f32 to vector<16x32xf32>
    %339 = arith.mulf %338, %337 : vector<16x32xf32>
    %340 = math.tanh %339 : vector<16x32xf32>
    %cst_107 = arith.constant 1.000000e+00 : f32
    %341 = vector.broadcast %cst_107 : f32 to vector<16x32xf32>
    %342 = arith.addf %341, %340 : vector<16x32xf32>
    %343 = arith.mulf %332, %342 : vector<16x32xf32>
    %c304 = arith.constant 304 : index
    %c0_108 = arith.constant 0 : index
    %344 = vector.load %arg3[%c304, %c0_108] : memref<344x32xf32, #tpu.memory_space<vmem>>, vector<32x32xf32>
    %cst_109 = arith.constant dense<0.000000e+00> : vector<16x32xf32>
    %345 = tpu.matmul %343, %344, %cst_109 {dimension_numbers = #tpu.dot_dimension_numbers<[1], [0], [0], [1], [0, 0, 1, 1], [], []>} : vector<16x32xf32>, vector<32x32xf32>, vector<16x32xf32> -> vector<16x32xf32>
    %c336 = arith.constant 336 : index
    %c0_110 = arith.constant 0 : index
    %346 = vector.load %arg3[%c336, %c0_110] : memref<344x32xf32, #tpu.memory_space<vmem>>, vector<1x32xf32>
    %347 = vector.broadcast %346 : vector<1x32xf32> to vector<16x32xf32>
    %348 = arith.addf %345, %347 : vector<16x32xf32>
    %349 = arith.addf %348, %301 : vector<16x32xf32>
    %350 = vector.shape_cast %349 : vector<16x32xf32> to vector<2x8x32xf32>
    %c0_111 = arith.constant 0 : index
    %c0_112 = arith.constant 0 : index
    %c0_113 = arith.constant 0 : index
    %351 = vector.load %arg5[%c0_111, %c0_112, %c0_113] : memref<2x8x32xf32, #tpu.memory_space<vmem>>, vector<2x8x32xf32>
    tpu.vector_store %arg5[%c0_111, %c0_112, %c0_113], %350 {strides = array<i32>} : memref<2x8x32xf32, #tpu.memory_space<vmem>>, vector<2x8x32xf32>,
    return
  }
  func.func @transform_0(%arg0: i32) -> (i32, i32, i32) {
    %c0_i32 = arith.constant 0 : i32
    %c0_i32_0 = arith.constant 0 : i32
    %c0_i32_1 = arith.constant 0 : i32
    return %arg0, %c0_i32, %c0_i32_0 : i32, i32, i32
  }
  func.func @transform_1(%arg0: i32) -> (i32, i32, i32) {
    %c0_i32 = arith.constant 0 : i32
    %c0_i32_0 = arith.constant 0 : i32
    %c0_i32_1 = arith.constant 0 : i32
    return %arg0, %c0_i32, %c0_i32_0 : i32, i32, i32
  }
  func.func @transform_2(%arg0: i32) -> (i32, i32) {
    %c0_i32 = arith.constant 0 : i32
    %c0_i32_0 = arith.constant 0 : i32
    %c0_i32_1 = arith.constant 0 : i32
    return %c0_i32, %c0_i32_0 : i32, i32
  }
  func.func @transform_3(%arg0: i32) -> (i32, i32) {
    %c0_i32 = arith.constant 0 : i32
    %c0_i32_0 = arith.constant 0 : i32
    %c0_i32_1 = arith.constant 0 : i32
    return %c0_i32, %c0_i32_0 : i32, i32
  }
  func.func @transform_4(%arg0: i32) -> (i32, i32, i32) {
    %c0_i32 = arith.constant 0 : i32
    %c0_i32_0 = arith.constant 0 : i32
    %c0_i32_1 = arith.constant 0 : i32
    return %arg0, %c0_i32, %c0_i32_0 : i32, i32, i32
  }
}

</mosaic_0001>

<bundles_post_ra>
// kernel: simple_fc_forward.1
= control target key start
LH: loop header
LB: loop body
LE: loop exit
PB: predicated region body
PF: predicated region fallthrough
CT: control target
= control target key end

     0   :  { %vm21_vm0 = vcmask 261120   ;;  %v4348_v38 = vmov 0.0   ;;  %vm4349_vm1 = vmmov 0   ;;  %s4350_s6 = smov 96   ;;  %vm160_vm2 = vcmask 64512   ;;  %s4351_s7 = smov 64   ;;  %s4994_s0 = inlined_call_operand.vmem [shape: f32[2,8,32], index: 0, kind: input, shape index: {}]   ;;  %s4995_s3 = inlined_call_operand.vmem [shape: f32[80,96], index: 3, kind: input, shape index: {}]   ;;  %s4996_s2 = inlined_call_operand.vmem [shape: f32[344,32], index: 2, kind: input, shape index: {}]   ;;  %s4997_s1 = inlined_call_operand.vmem [shape: f32[2,1,32], index: 1, kind: input, shape index: {}]   ;;  %s4998_s4 = inlined_call_operand.vmem [shape: f32[2,8,32], index: 4, kind: output, shape index: {}]  }
   0x1   :  { %v4392_v0 = vld [vmem:[%s4994_s0] sm:$0xff]  ;;  %v4397_v1 = vld [vmem:[%s4994_s0 + $0x8] sm:$0xff]  ;;  %v68_v8 = vld [vmem:[%s4995_s3 + $0x18] sm:$0xff]  ;;  %3996 = vmatprep.subr.mxu1 %v4348_v38  ;;  %3998 = vmatprep.mubr.msk.f32.mxu1 %vm4349_vm1, %v4348_v38  ;;  %s4352_s8 = smov 88   ;;  %s4353_s9 = smov 120   ;;  %vm1507_vm3 = vcmask 195584  }
   0x2   :  { %v22_v2 = vsel %vm21_vm0, %v4392_v0, 0.0  ;;  %v31_v3 = vmul.f32 %v4392_v0, %v4392_v0  ;;  %v32_v4 = vmul.f32 %v4397_v1, %v4397_v1  ;;  %v25_v6 = vsel %vm21_vm0, %v4397_v1, 0.0  ;;  %v67_v9 = vld [vmem:[%s4995_s3 + $0x10] sm:$0xff]  ;;  %3985 = vmatprep.subr.mxu0 %v68_v8  ;;  %v66_v10 = vld [vmem:[%s4995_s3 + $0x8] sm:$0xff]  ;;  %v65_v11 = vld [vmem:[%s4995_s3] sm:$0xff]  ;;  %s4354_s10 = smov 56  }
   0x3   :  { %23 = vadd.xlane.f32.xlu0 %v22_v2  ;;  %3986 = vmatpush3.msra.mxu0 %v68_v8  ;;  %v3782_v28 = vld [vmem:[%s4996_s2] ss:$0 sm:$0xff]  ;;  %v3783_v30 = vld [vmem:[%s4996_s2 + $0x8] ss:$0 sm:$0xff]  ;;  %s4355_s11 = smov 80   ;;  %s4356_s12 = smov 112  }
   0x4   :  { %v33_v5 = vsel %vm21_vm0, %v31_v3, 0.0  ;;  %v36_v7 = vsel %vm21_vm0, %v32_v4, 0.0  ;;  %3987 = vmatprep.subr.mxu0 %v67_v9  ;;  %v3784_v39 = vld [vmem:[%s4995_s3 + $0x20] ss:$0 sm:$0xff]  ;;  %s4357_s13 = smov 48   ;;  %s4358_s14 = smov 72  }
   0x5   :  { %34 = vadd.xlane.f32.xlu1 %v33_v5  ;;  %3988 = vmatpush3.msra.mxu0 %v67_v9  ;;  %s4359_s15 = smov 104   ;;  %s4360_s16 = smov 40   ;;  %vm1504_vm4 = vcmask 130048  }
   0x6   :  { %3989 = vmatprep.subr.mxu0 %v66_v10  ;;  %s4361_s17 = smov 8   ;;  %s4362_s18 = smov 16  }
   0x7   :  { %26 = vadd.xlane.f32.xlu0 %v25_v6  ;;  %3990 = vmatpush3.msra.mxu0 %v66_v10  ;;  %s4363_s26 = smov 24  }
   0x8   :  { %3991 = vmatprep.subr.mxu0 %v65_v11 }
   0x9   :  { %37 = vadd.xlane.f32.xlu1 %v36_v7  ;;  %3992 = vmatpush3.msra.mxu0 %v65_v11 }
   0xa   :  { %4016 = vmatprep.subr.mxu0 %v4348_v38 }
  0x8c   :  { %v24_v12 = vpop.xlane.xlu0 %23 }
  0x8d   :  { %v29_v13 = vmul.f32 0.03125, %v24_v12 }
  0x8e   :  { %v35_v14 = vpop.xlane.xlu1 %34 }
  0x8f   :  { %v41_v15 = vmul.f32 %v29_v13, %v29_v13  ;;  %v39_v16 = vmul.f32 0.03125, %v35_v14  ;;  %v45_v26 = vsub.f32 %v4392_v0, %v29_v13 }
  0x90   :  { %v27_v17 = vpop.xlane.xlu0 %26 }
  0x91   :  { %v43_v18 = vsub.f32 %v39_v16, %v41_v15  ;;  %v30_v19 = vmul.f32 0.03125, %v27_v17 }
  0x92   :  { %v38_v20 = vpop.xlane.xlu1 %37 }
  0x93   :  { %v47_v21 = vadd.f32 1e-05, %v43_v18  ;;  %v42_v22 = vmul.f32 %v30_v19, %v30_v19  ;;  %v40_v23 = vmul.f32 0.03125, %v38_v20  ;;  %v46_v31 = vsub.f32 %v4397_v1, %v30_v19 }
  0x95   :  { %4260 = vrsqrt.f32 %v47_v21  ;;  %v44_v24 = vsub.f32 %v40_v23, %v42_v22 }
  0x97   :  { %v48_v25 = vadd.f32 1e-05, %v44_v24 }
  0x99   :  { %4262 = vrsqrt.f32 %v48_v25 }
  0xa2   :  { %v4261_v27 = vpop.eup %4260 }
  0xa3   :  { %v51_v29 = vmul.f32 %v4261_v27, %v45_v26 }
  0xa5   :  { %v57_v32 = vmul.f32 %v3782_v28, %v51_v29 }
  0xa6   :  { %v4263_v33 = vpop.eup %4262 }
  0xa7   :  { %v52_v34 = vmul.f32 %v4263_v33, %v46_v31  ;;  %v63_v35 = vadd.f32 %v3783_v30, %v57_v32 }
  0xa9   :  { %v58_v36 = vmul.f32 %v3782_v28, %v52_v34  ;;  %3993 = vmatprep.mubr.msk.f32.mxu0 %vm21_vm0, %v63_v35 }
  0xab   :  { %v64_v37 = vadd.f32 %v3783_v30, %v58_v36 }
  0xad   :  { %3994 = vmatmul.mubr.msk.f32.vlgmr.msra.gmra.mxu0 %vm21_vm0, %v64_v37 }
  0xae   :  { %4018 = vmatprep.mubr.msk.f32.mxu0 %vm4349_vm1, %v4348_v38 }
 0x16d   :  { %v3995_v40 = vpop.f32.mrf.mxu0 }
 0x16e   :  { %v4440_v41 = vadd.f32 %v3995_v40, %v3784_v39 }
 0x16f   :  { %v146_v42 = vpop.f32.mrf.mxu0 }
 0x170   :  { %v4442_v43 = vadd.f32 %v3784_v39, %v146_v42  ;;  %237 = vrot.lane.b32.xlu1 %v4440_v41, %s4350_s6  ;;  %v4459_v47 = vmul.f32 0.35355338, %v4440_v41 }
 0x172   :  { %158 = vrot.lane.b32.xlu0 %v4442_v43, %s4350_s6  ;;  %v4450_v45 = vmul.f32 0.35355338, %v4442_v43 }
 0x1e2   :  { %v238_v46 = vpop.permute.xlu1 %237 }
 0x1e4   :  { %v159_v44 = vpop.permute.xlu0 %158 }
 0x1e5   :  { %3997 = vmatpush3.xpose.msk.msra.mxu1 %vm160_vm2, %v159_v44 }
 0x1e6   :  { %4001 = vmatprep.subr.mxu1 %v4348_v38 }
 0x1e8   :  { %3999 = vmatmul.mubr.msk.f32.vlgmr.msra.gmra.mxu1 %vm160_vm2, %v4450_v45 }
 0x1e9   :  { %4002 = vmatpush3.xpose.msk.msra.mxu1 %vm160_vm2, %v238_v46  ;;  %4003 = vmatprep.mubr.msk.f32.mxu1 %vm4349_vm1, %v4348_v38 }
 0x1ea   :  { %4006 = vmatprep.subr.mxu1 %v4348_v38 }
 0x1ec   :  { %4004 = vmatmul.mubr.msk.f32.vlgmr.msra.gmra.mxu1 %vm160_vm2, %v4459_v47 }
 0x1ed   :  { %4008 = vmatprep.mubr.msk.f32.mxu1 %vm4349_vm1, %v4348_v38 }
 0x2a8   :  { %v232_v48 = vpop.f32.mrf.mxu1 }
 0x2a9   :  { %v314_v49 = vsel %vm160_vm2, %v232_v48, -inf }
 0x2aa   :  { %315 = vmax.xlane.f32.xlu1 %v314_v49  ;;  %v4000_v50 = vpop.f32.mrf.mxu1 }
 0x2ac   :  { %v310_v51 = vpop.f32.mrf.mxu1 }
 0x2ad   :  { %v317_v52 = vsel %vm160_vm2, %v310_v51, -inf }
 0x2ae   :  { %318 = vmax.xlane.f32.xlu0 %v317_v52  ;;  %v4005_v53 = vpop.f32.mrf.mxu1 }
 0x2bb   :  { %412 = vrot.lane.b32.xlu1 %v4440_v41, %s4351_s7 }
 0x2bf   :  { %490 = vrot.lane.b32.xlu1 %v4442_v43, %s4352_s8 }
 0x2c3   :  { %568 = vrot.lane.b32.xlu1 %v4440_v41, %s4352_s8 }
 0x333   :  { %v316_v54 = vpop.xlane.xlu1 %315 }
 0x334   :  { %v320_v55 = vsub.f32 %v232_v48, %v316_v54 }
 0x336   :  { %v322_v56 = vmul.f32 1.442695, %v320_v55 }
 0x337   :  { %v413_v57 = vpop.permute.xlu1 %412  ;;  %v319_v58 = vpop.xlane.xlu0 %318 }
 0x338   :  { %4264 = vpow2.f32 %v322_v56  ;;  %v321_v59 = vsub.f32 %v310_v51, %v319_v58 }
 0x33a   :  { %v324_v60 = vmul.f32 1.442695, %v321_v59 }
 0x33b   :  { %v491_v61 = vpop.permute.xlu1 %490 }
 0x33c   :  { %4266 = vpow2.f32 %v324_v60  ;;  %4017 = vmatpush3.xpose.msk.msra.mxu0 %vm160_vm2, %v491_v61 }
 0x33d   :  { %4026 = vmatprep.subr.mxu0 %v4348_v38 }
 0x33f   :  { %v569_v4 = vpop.permute.xlu1 %568 }
 0x345   :  { %v4265_v62 = vpop.eup %4264 }
 0x346   :  { %v326_v63 = vsel %vm160_vm2, %v4265_v62, 0.0 }
 0x347   :  { %327 = vadd.xlane.f32.xlu0 %v326_v63 }
 0x349   :  { %v4267_v2 = vpop.eup %4266 }
 0x34a   :  { %v329_v3 = vsel %vm160_vm2, %v4267_v2, 0.0 }
 0x34b   :  { %330 = vadd.xlane.f32.xlu1 %v329_v3 }
 0x35c   :  { %566 = vrot.lane.b32.xlu1 %v4459_v47, %s4353_s9 }
 0x35d   :  { %336 = vrot.lane.b32.xlu0 %v4442_v43, %s4351_s7 }
 0x361   :  { %488 = vrot.lane.b32.xlu0 %v4450_v45, %s4353_s9 }
 0x3d0   :  { %v328_v5 = vpop.xlane.xlu0 %327 }
 0x3d1   :  { %4268 = vrcp.f32 %v328_v5 }
 0x3d4   :  { %v331_v6 = vpop.xlane.xlu1 %330  ;;  %v337_v7 = vpop.permute.xlu0 %336 }
 0x3d5   :  { %4270 = vrcp.f32 %v331_v6  ;;  %4007 = vmatpush3.msra.mxu1 %v337_v7 }
 0x3d6   :  { %4011 = vmatprep.subr.mxu1 %v4348_v38 }
 0x3d8   :  { %v489_v8 = vpop.permute.xlu0 %488  ;;  %v567_v13 = vpop.permute.xlu1 %566 }
 0x3d9   :  { %4019 = vmatmul.mubr.msk.f32.vlgmr.msra.gmra.mxu0 %vm160_vm2, %v489_v8 }
 0x3da   :  { %4028 = vmatprep.mubr.msk.f32.mxu0 %vm4349_vm1, %v4348_v38 }
 0x3de   :  { %v4269_v9 = vpop.eup %4268 }
 0x3df   :  { %v334_v10 = vmul.f32 %v4269_v9, %v4265_v62 }
 0x3e1   :  { %4009 = vmatmul.mubr.msk.f32.vlgmr.msra.gmra.mxu1 %vm160_vm2, %v334_v10 }
 0x3e2   :  { %v4271_v11 = vpop.eup %4270  ;;  %4012 = vmatpush3.msra.mxu1 %v413_v57  ;;  %4013 = vmatprep.mubr.msk.f32.mxu1 %vm4349_vm1, %v4348_v38 }
 0x3e3   :  { %4021 = vmatprep.subr.mxu1 %v4348_v38  ;;  %v335_v12 = vmul.f32 %v4271_v11, %v4267_v2 }
 0x3e5   :  { %4014 = vmatmul.mubr.msk.f32.vlgmr.msra.gmra.mxu1 %vm160_vm2, %v335_v12 }
 0x3e6   :  { %4022 = vmatpush3.xpose.msk.msra.mxu1 %vm160_vm2, %v569_v4  ;;  %4023 = vmatprep.mubr.msk.f32.mxu1 %vm4349_vm1, %v4348_v38 }
 0x3e7   :  { %4031 = vmatprep.subr.mxu1 %v4348_v38 }
 0x3e9   :  { %4024 = vmatmul.mubr.msk.f32.vlgmr.msra.gmra.mxu1 %vm160_vm2, %v567_v13 }
 0x3ea   :  { %4033 = vmatprep.mubr.msk.f32.mxu1 %vm4349_vm1, %v4348_v38 }
 0x499   :  { %v562_v14 = vpop.f32.mrf.mxu0 }
 0x49a   :  { %v644_v15 = vsel %vm160_vm2, %v562_v14, -inf }
 0x49b   :  { %645 = vmax.xlane.f32.xlu0 %v644_v15  ;;  %v4020_v16 = vpop.f32.mrf.mxu0 }
 0x4a1   :  { %v4501_v17 = vpop.f32.mrf.mxu1 }
 0x4a3   :  { %v4010_v18 = vpop.f32.mrf.mxu1 }
 0x4a5   :  { %v4503_v19 = vpop.f32.mrf.mxu1 }
 0x4a7   :  { %v4015_v20 = vpop.f32.mrf.mxu1 }
 0x4a9   :  { %v640_v21 = vpop.f32.mrf.mxu1 }
 0x4aa   :  { %v647_v22 = vsel %vm160_vm2, %v640_v21, -inf }
 0x4ab   :  { %648 = vmax.xlane.f32.xlu1 %v647_v22  ;;  %v4025_v23 = vpop.f32.mrf.mxu1 }
 0x4bc   :  { %742 = vrot.lane.b32.xlu1 %v4440_v41, %s4354_s10 }
 0x4c0   :  { %820 = vrot.lane.b32.xlu1 %v4442_v43, %s4355_s11 }
 0x4c4   :  { %898 = vrot.lane.b32.xlu1 %v4440_v41, %s4355_s11 }
 0x4c8   :  { %896 = vrot.lane.b32.xlu1 %v4459_v47, %s4356_s12 }
 0x524   :  { %v646_v24 = vpop.xlane.xlu0 %645 }
 0x525   :  { %v650_v25 = vsub.f32 %v562_v14, %v646_v24 }
 0x527   :  { %v652_v26 = vmul.f32 1.442695, %v650_v25 }
 0x529   :  { %4272 = vpow2.f32 %v652_v26 }
 0x534   :  { %v649_v27 = vpop.xlane.xlu1 %648 }
 0x535   :  { %v651_v31 = vsub.f32 %v640_v21, %v649_v27 }
 0x536   :  { %v4273_v28 = vpop.eup %4272 }
 0x537   :  { %v656_v29 = vsel %vm160_vm2, %v4273_v28, 0.0  ;;  %v654_v32 = vmul.f32 1.442695, %v651_v31 }
 0x538   :  { %657 = vadd.xlane.f32.xlu0 %v656_v29  ;;  %v743_v30 = vpop.permute.xlu1 %742 }
 0x539   :  { %4032 = vmatpush3.msra.mxu1 %v743_v30  ;;  %4274 = vpow2.f32 %v654_v32 }
 0x53a   :  { %4041 = vmatprep.subr.mxu1 %v4348_v38 }
 0x53c   :  { %v821_v40 = vpop.permute.xlu1 %820 }
 0x540   :  { %v899_v48 = vpop.permute.xlu1 %898 }
 0x544   :  { %v897_v50 = vpop.permute.xlu1 %896 }
 0x546   :  { %v4275_v33 = vpop.eup %4274 }
 0x547   :  { %v659_v34 = vsel %vm160_vm2, %v4275_v33, 0.0 }
 0x54e   :  { %666 = vrot.lane.b32.xlu0 %v4442_v43, %s4354_s10 }
 0x56d   :  { %660 = vadd.xlane.f32.xlu0 %v659_v34 }
 0x583   :  { %818 = vrot.lane.b32.xlu0 %v4450_v45, %s4356_s12 }
 0x5c1   :  { %v658_v35 = vpop.xlane.xlu0 %657 }
 0x5c2   :  { %4276 = vrcp.f32 %v658_v35 }
 0x5c5   :  { %v667_v36 = vpop.permute.xlu0 %666 }
 0x5c6   :  { %4027 = vmatpush3.msra.mxu0 %v667_v36 }
 0x5c7   :  { %4036 = vmatprep.subr.mxu0 %v4348_v38 }
 0x5cf   :  { %v4277_v37 = vpop.eup %4276 }
 0x5d0   :  { %v664_v39 = vmul.f32 %v4277_v37, %v4273_v28 }
 0x5d2   :  { %4029 = vmatmul.mubr.msk.f32.vlgmr.msra.gmra.mxu0 %vm160_vm2, %v664_v39 }
 0x5d3   :  { %4037 = vmatpush3.xpose.msk.msra.mxu0 %vm160_vm2, %v821_v40  ;;  %4038 = vmatprep.mubr.msk.f32.mxu0 %vm4349_vm1, %v4348_v38 }
 0x5d4   :  { %4046 = vmatprep.subr.mxu0 %v4348_v38 }
 0x5f6   :  { %v661_v42 = vpop.xlane.xlu0 %660 }
 0x5f7   :  { %4278 = vrcp.f32 %v661_v42 }
 0x5fa   :  { %v819_v44 = vpop.permute.xlu0 %818 }
 0x5fb   :  { %4039 = vmatmul.mubr.msk.f32.vlgmr.msra.gmra.mxu0 %vm160_vm2, %v819_v44 }
 0x5fc   :  { %4048 = vmatprep.mubr.msk.f32.mxu0 %vm4349_vm1, %v4348_v38 }
 0x604   :  { %v4279_v46 = vpop.eup %4278 }
 0x605   :  { %v665_v49 = vmul.f32 %v4279_v46, %v4275_v33 }
 0x607   :  { %4034 = vmatmul.mubr.msk.f32.vlgmr.msra.gmra.mxu1 %vm160_vm2, %v665_v49 }
 0x608   :  { %4042 = vmatpush3.xpose.msk.msra.mxu1 %vm160_vm2, %v899_v48  ;;  %4043 = vmatprep.mubr.msk.f32.mxu1 %vm4349_vm1, %v4348_v38 }
 0x609   :  { %4051 = vmatprep.subr.mxu1 %v4348_v38 }
 0x60b   :  { %4044 = vmatmul.mubr.msk.f32.vlgmr.msra.gmra.mxu1 %vm160_vm2, %v897_v50 }
 0x60c   :  { %4053 = vmatprep.mubr.msk.f32.mxu1 %vm4349_vm1, %v4348_v38 }
 0x692   :  { %v4538_v51 = vpop.f32.mrf.mxu0 }
 0x694   :  { %v4030_v52 = vpop.f32.mrf.mxu0 }
 0x6bb   :  { %v892_v53 = vpop.f32.mrf.mxu0 }
 0x6bc   :  { %v974_v54 = vsel %vm160_vm2, %v892_v53, -inf }
 0x6bd   :  { %975 = vmax.xlane.f32.xlu0 %v974_v54  ;;  %v4040_v55 = vpop.f32.mrf.mxu0  ;;  %v1511_v54 = vld [vmem:[%s4996_s2 + $0x18] sm:$0xff] }
 0x6be   :  { %v1510_v55 = vld [vmem:[%s4996_s2 + $0x10] sm:$0xff] }
 0x6c7   :  { %v4541_v56 = vpop.f32.mrf.mxu1 }
 0x6c9   :  { %v4035_v57 = vpop.f32.mrf.mxu1 }
 0x6cb   :  { %v970_v58 = vpop.f32.mrf.mxu1 }
 0x6cc   :  { %v977_v59 = vsel %vm160_vm2, %v970_v58, -inf }
 0x6cd   :  { %978 = vmax.xlane.f32.xlu1 %v977_v59  ;;  %v4045_v60 = vpop.f32.mrf.mxu1 }
 0x6de   :  { %1072 = vrot.lane.b32.xlu1 %v4440_v41, %s4357_s13 }
 0x6e2   :  { %1150 = vrot.lane.b32.xlu1 %v4442_v43, %s4358_s14 }
 0x6e6   :  { %1228 = vrot.lane.b32.xlu1 %v4440_v41, %s4358_s14 }
 0x6ea   :  { %1226 = vrot.lane.b32.xlu1 %v4459_v47, %s4359_s15 }
 0x746   :  { %v976_v61 = vpop.xlane.xlu0 %975 }
 0x747   :  { %v980_v62 = vsub.f32 %v892_v53, %v976_v61  ;;  %v1512_v53 = vld [vmem:[%s4996_s2 + $0x20] sm:$0xff] }
 0x749   :  { %v982_v63 = vmul.f32 1.442695, %v980_v62 }
 0x74b   :  { %4280 = vpow2.f32 %v982_v63 }
 0x756   :  { %v979_v2 = vpop.xlane.xlu1 %978 }
 0x757   :  { %v981_v6 = vsub.f32 %v970_v58, %v979_v2 }
 0x758   :  { %v4281_v3 = vpop.eup %4280 }
 0x759   :  { %v986_v4 = vsel %vm160_vm2, %v4281_v3, 0.0  ;;  %v984_v7 = vmul.f32 1.442695, %v981_v6 }
 0x75a   :  { %987 = vadd.xlane.f32.xlu0 %v986_v4  ;;  %v1073_v5 = vpop.permute.xlu1 %1072 }
 0x75b   :  { %4052 = vmatpush3.msra.mxu1 %v1073_v5  ;;  %4282 = vpow2.f32 %v984_v7 }
 0x75c   :  { %4061 = vmatprep.subr.mxu1 %v4348_v38 }
 0x75e   :  { %v1151_v13 = vpop.permute.xlu1 %1150 }
 0x762   :  { %v1229_v16 = vpop.permute.xlu1 %1228 }
 0x766   :  { %v1227_v20 = vpop.permute.xlu1 %1226 }
 0x768   :  { %v4283_v47 = vpop.eup %4282 }
 0x769   :  { %v989_v8 = vsel %vm160_vm2, %v4283_v47, 0.0 }
 0x770   :  { %996 = vrot.lane.b32.xlu0 %v4442_v43, %s4357_s13 }
 0x78f   :  { %990 = vadd.xlane.f32.xlu0 %v989_v8 }
 0x7a5   :  { %1148 = vrot.lane.b32.xlu0 %v4450_v45, %s4359_s15 }
 0x7e3   :  { %v988_v9 = vpop.xlane.xlu0 %987 }
 0x7e4   :  { %4284 = vrcp.f32 %v988_v9 }
 0x7e7   :  { %v997_v10 = vpop.permute.xlu0 %996 }
 0x7e8   :  { %4047 = vmatpush3.msra.mxu0 %v997_v10 }
 0x7e9   :  { %4056 = vmatprep.subr.mxu0 %v4348_v38 }
 0x7f1   :  { %v4285_v11 = vpop.eup %4284 }
 0x7f2   :  { %v994_v12 = vmul.f32 %v4285_v11, %v4281_v3 }
 0x7f4   :  { %4049 = vmatmul.mubr.msk.f32.vlgmr.msra.gmra.mxu0 %vm160_vm2, %v994_v12 }
 0x7f5   :  { %4057 = vmatpush3.xpose.msk.msra.mxu0 %vm160_vm2, %v1151_v13  ;;  %4058 = vmatprep.mubr.msk.f32.mxu0 %vm4349_vm1, %v4348_v38 }
 0x7f6   :  { %4066 = vmatprep.subr.mxu0 %v4348_v38 }
 0x818   :  { %v991_v14 = vpop.xlane.xlu0 %990 }
 0x819   :  { %4286 = vrcp.f32 %v991_v14 }
 0x81c   :  { %v1149_v45 = vpop.permute.xlu0 %1148 }
 0x81d   :  { %4059 = vmatmul.mubr.msk.f32.vlgmr.msra.gmra.mxu0 %vm160_vm2, %v1149_v45 }
 0x81e   :  { %4068 = vmatprep.mubr.msk.f32.mxu0 %vm4349_vm1, %v4348_v38 }
 0x826   :  { %v4287_v15 = vpop.eup %4286 }
 0x827   :  { %v995_v18 = vmul.f32 %v4287_v15, %v4283_v47 }
 0x829   :  { %4054 = vmatmul.mubr.msk.f32.vlgmr.msra.gmra.mxu1 %vm160_vm2, %v995_v18  ;;  %v1649_v18 = vld [vmem:[%s4996_s2 + $0x60] sm:$0xff] }
 0x82a   :  { %4062 = vmatpush3.xpose.msk.msra.mxu1 %vm160_vm2, %v1229_v16  ;;  %4063 = vmatprep.mubr.msk.f32.mxu1 %vm4349_vm1, %v4348_v38 }
 0x82b   :  { %4071 = vmatprep.subr.mxu1 %v4348_v38 }
 0x82d   :  { %4064 = vmatmul.mubr.msk.f32.vlgmr.msra.gmra.mxu1 %vm160_vm2, %v1227_v20  ;;  %v1648_v20 = vld [vmem:[%s4996_s2 + $0x58] sm:$0xff] }
 0x82e   :  { %4073 = vmatprep.mubr.msk.f32.mxu1 %vm4349_vm1, %v4348_v38 }
 0x8b4   :  { %v1068_v21 = vpop.f32.mrf.mxu0 }
 0x8b6   :  { %v4050_v22 = vpop.f32.mrf.mxu0 }
 0x8b7   :  { %v1646_v22 = vld [vmem:[%s4996_s2 + $0x48] sm:$0xff] }
 0x8dd   :  { %v1222_v23 = vpop.f32.mrf.mxu0 }
 0x8de   :  { %v1304_v24 = vsel %vm160_vm2, %v1222_v23, -inf }
 0x8df   :  { %1305 = vmax.xlane.f32.xlu0 %v1304_v24  ;;  %v4060_v25 = vpop.f32.mrf.mxu0 }
 0x8e9   :  { %v1144_v26 = vpop.f32.mrf.mxu1 }
 0x8eb   :  { %v4055_v27 = vpop.f32.mrf.mxu1 }
 0x8ed   :  { %v1300_v28 = vpop.f32.mrf.mxu1 }
 0x8ee   :  { %v1307_v29 = vsel %vm160_vm2, %v1300_v28, -inf }
 0x8ef   :  { %1308 = vmax.xlane.f32.xlu1 %v1307_v29  ;;  %v4065_v30 = vpop.f32.mrf.mxu1 }
 0x900   :  { %1402 = vrot.lane.b32.xlu1 %v4440_v41, %s4360_s16 }
 0x904   :  { %1480 = vrot.lane.b32.xlu1 %v4538_v51, %s4361_s17 }
 0x908   :  { %1482 = vrot.lane.b32.xlu1 %v4541_v56, %s4361_s17 }
 0x90c   :  { %1490 = vrot.lane.b32.xlu1 %v1144_v26, %s4362_s18 }
 0x968   :  { %v1306_v31 = vpop.xlane.xlu0 %1305 }
 0x969   :  { %v1310_v32 = vsub.f32 %v1222_v23, %v1306_v31 }
 0x96b   :  { %v1312_v33 = vmul.f32 1.442695, %v1310_v32 }
 0x96d   :  { %4288 = vpow2.f32 %v1312_v33 }
 0x978   :  { %v1309_v34 = vpop.xlane.xlu1 %1308 }
 0x979   :  { %v1311_v35 = vsub.f32 %v1300_v28, %v1309_v34 }
 0x97a   :  { %v4289_v36 = vpop.eup %4288 }
 0x97b   :  { %v1314_v37 = vmul.f32 1.442695, %v1311_v35  ;;  %v1316_v41 = vsel %vm160_vm2, %v4289_v36, 0.0 }
 0x97c   :  { %1317 = vadd.xlane.f32.xlu0 %v1316_v41  ;;  %v1403_v39 = vpop.permute.xlu1 %1402 }
 0x97d   :  { %4290 = vpow2.f32 %v1314_v37  ;;  %4072 = vmatpush3.msra.mxu1 %v1403_v39  ;;  %v3814_v39 = vld [vmem:[%s4996_s2 + $0x38] ss:$0 sm:$0xff] }
 0x97e   :  { %4087 = vmatprep.subr.mxu1 %v1649_v18 }
 0x980   :  { %v1481_v60 = vpop.permute.xlu1 %1480 }
 0x981   :  { %v1502_v62 = vsel %vm160_vm2, %v4501_v17, %v1481_v60  ;;  %v3811_v17 = vld [vmem:[%s4996_s2 + $0x30] ss:$0 sm:$0xff] }
 0x984   :  { %v1483_v3 = vpop.permute.xlu1 %1482 }
 0x985   :  { %v1503_v6 = vsel %vm160_vm2, %v4503_v19, %v1483_v3 }
 0x988   :  { %v1491_v5 = vpop.permute.xlu1 %1490 }
 0x989   :  { %v1506_v7 = vsel %vm1504_vm4, %v1503_v6, %v1491_v5 }
 0x98a   :  { %v4291_v40 = vpop.eup %4290 }
 0x98b   :  { %v1319_v42 = vsel %vm160_vm2, %v4291_v40, 0.0 }
 0x98c   :  { %1320 = vadd.xlane.f32.xlu0 %v1319_v42  ;;  %v3815_v42 = vld [vmem:[%s4996_s2 + $0x40] ss:$0 sm:$0xff] }
 0x9a2   :  { %1326 = vrot.lane.b32.xlu0 %v4442_v43, %s4360_s16  ;;  %v1513_v43 = vld [vmem:[%s4996_s2 + $0x28] sm:$0xff] }
 0x9a6   :  { %1488 = vrot.lane.b32.xlu0 %v1068_v21, %s4362_s18  ;;  %v1647_v21 = vld [vmem:[%s4996_s2 + $0x50] sm:$0xff] }
 0xa05   :  { %v1318_v44 = vpop.xlane.xlu0 %1317 }
 0xa06   :  { %4292 = vrcp.f32 %v1318_v44 }
 0xa13   :  { %v4293_v48 = vpop.eup %4292 }
 0xa14   :  { %v1324_v50 = vmul.f32 %v4293_v48, %v4289_v36 }
 0xa15   :  { %v1321_v46 = vpop.xlane.xlu0 %1320 }
 0xa16   :  { %4294 = vrcp.f32 %v1321_v46 }
 0xa19   :  { %v1327_v49 = vpop.permute.xlu0 %1326 }
 0xa1a   :  { %4067 = vmatpush3.msra.mxu0 %v1327_v49 }
 0xa1b   :  { %4069 = vmatmul.mubr.msk.f32.vlgmr.msra.gmra.mxu0 %vm160_vm2, %v1324_v50  ;;  %4076 = vmatprep.subr.mxu0 %v1513_v43 }
 0xa1c   :  { %4077 = vmatpush3.msra.mxu0 %v1513_v43  ;;  %v1757_v43 = vld [vmem:[%s4996_s2 + $0x88] sm:$0xff] }
 0xa1d   :  { %4078 = vmatprep.subr.mxu0 %v1512_v53  ;;  %v1489_v61 = vpop.permute.xlu0 %1488 }
 0xa1e   :  { %4079 = vmatpush3.msra.mxu0 %v1512_v53  ;;  %v1505_v63 = vsel %vm1504_vm4, %v1502_v62, %v1489_v61  ;;  %v1756_v53 = vld [vmem:[%s4996_s2 + $0x80] sm:$0xff] }
 0xa1f   :  { %4080 = vmatprep.subr.mxu0 %v1511_v54 }
 0xa20   :  { %4081 = vmatpush3.msra.mxu0 %v1511_v54  ;;  %v1755_v54 = vld [vmem:[%s4996_s2 + $0x78] sm:$0xff] }
 0xa21   :  { %4082 = vmatprep.subr.mxu0 %v1510_v55 }
 0xa22   :  { %4083 = vmatpush3.msra.mxu0 %v1510_v55  ;;  %v1754_v55 = vld [vmem:[%s4996_s2 + $0x70] sm:$0xff] }
 0xa23   :  { %v4295_v51 = vpop.eup %4294  ;;  %4098 = vmatprep.subr.mxu0 %v1757_v43 }
 0xa24   :  { %v1325_v52 = vmul.f32 %v4295_v51, %v4291_v40 }
 0xa26   :  { %4074 = vmatmul.mubr.msk.f32.vlgmr.msra.gmra.mxu1 %vm160_vm2, %v1325_v52 }
 0xa27   :  { %4088 = vmatpush3.msra.mxu1 %v1649_v18  ;;  %v3819_v18 = vld [vmem:[%s4996_s2 + $0x90] ss:$0 sm:$0xff] }
 0xa28   :  { %4089 = vmatprep.subr.mxu1 %v1648_v20 }
 0xa29   :  { %4090 = vmatpush3.msra.mxu1 %v1648_v20 }
 0xa2a   :  { %4091 = vmatprep.subr.mxu1 %v1647_v21 }
 0xa2b   :  { %4092 = vmatpush3.msra.mxu1 %v1647_v21 }
 0xa2c   :  { %4093 = vmatprep.subr.mxu1 %v1646_v22 }
 0xa2d   :  { %4094 = vmatpush3.msra.mxu1 %v1646_v22 }
 0xadb   :  { %v1398_v56 = vpop.f32.mrf.mxu0 }
 0xadc   :  { %1496 = vrot.lane.b32.xlu0 %v1398_v56, %s4363_s26  ;;  %v3816_v56 = vld [vmem:[%s4996_s2 + $0x68] ss:$0 sm:$0xff] }
 0xadd   :  { %v4070_v57 = vpop.f32.mrf.mxu0 }
 0xae6   :  { %v1474_v58 = vpop.f32.mrf.mxu1 }
 0xae7   :  { %1498 = vrot.lane.b32.xlu1 %v1474_v58, %s4363_s26 }
 0xae8   :  { %v4075_v59 = vpop.f32.mrf.mxu1 }
 0xb4e   :  { %v1497_v2 = vpop.permute.xlu0 %1496 }
 0xb4f   :  { %v1508_v4 = vsel %vm1507_vm3, %v1505_v63, %v1497_v2 }
 0xb50   :  { %4084 = vmatprep.mubr.msk.f32.mxu0 %vm21_vm0, %v1508_v4 }
 0xb59   :  { %v1499_v47 = vpop.permute.xlu1 %1498 }
 0xb5a   :  { %v1509_v8 = vsel %vm1507_vm3, %v1506_v7, %v1499_v47 }
 0xb5b   :  { %4085 = vmatmul.mubr.msk.f32.vlgmr.msra.gmra.mxu0 %vm21_vm0, %v1509_v8 }
 0xb5c   :  { %4099 = vmatpush3.msra.mxu0 %v1757_v43 }
 0xb5d   :  { %4100 = vmatprep.subr.mxu0 %v1756_v53 }
 0xb5e   :  { %4101 = vmatpush3.msra.mxu0 %v1756_v53 }
 0xb5f   :  { %4102 = vmatprep.subr.mxu0 %v1755_v54 }
 0xb60   :  { %4103 = vmatpush3.msra.mxu0 %v1755_v54 }
 0xb61   :  { %4104 = vmatprep.subr.mxu0 %v1754_v55 }
 0xb62   :  { %4105 = vmatpush3.msra.mxu0 %v1754_v55 }
 0xc1b   :  { %v4086_v9 = vpop.f32.mrf.mxu0 }
 0xc1c   :  { %v1597_v10 = vadd.f32 %v4086_v9, %v3811_v17 }
 0xc1d   :  { %v1591_v11 = vpop.f32.mrf.mxu0 }
 0xc1e   :  { %v4620_v12 = vadd.f32 %v1597_v10, %v4397_v1  ;;  %v1592_v13 = vadd.f32 %v3811_v17, %v1591_v11 }
 0xc20   :  { %v4623_v19 = vadd.f32 %v1592_v13, %v4392_v0  ;;  %v1607_v14 = vsel %vm21_vm0, %v4620_v12, 0.0  ;;  %v1613_v1 = vmul.f32 %v4620_v12, %v4620_v12 }
 0xc21   :  { %1608 = vadd.xlane.f32.xlu1 %v1607_v14 }
 0xc22   :  { %v1604_v45 = vsel %vm21_vm0, %v4623_v19, 0.0  ;;  %v1612_v15 = vmul.f32 %v4623_v19, %v4623_v19  ;;  %v1617_v0 = vsel %vm21_vm0, %v1613_v1, 0.0  ;;  %v1849_v1 = vld [vmem:[%s4996_s2 + $0xa0] sm:$0xff] }
 0xc23   :  { %1605 = vadd.xlane.f32.xlu0 %v1604_v45 }
 0xc24   :  { %v1614_v16 = vsel %vm21_vm0, %v1612_v15, 0.0  ;;  %v1851_v15 = vld [vmem:[%s4996_s2 + $0xb0] sm:$0xff] }
 0xc25   :  { %4109 = vmatprep.subr.mxu1 %v1851_v15 }
 0xc27   :  { %1615 = vadd.xlane.f32.xlu0 %v1614_v16  ;;  %v1850_v16 = vld [vmem:[%s4996_s2 + $0xa8] sm:$0xff] }
 0xc2b   :  { %1618 = vadd.xlane.f32.xlu0 %v1617_v0  ;;  %v1848_v0 = vld [vmem:[%s4996_s2 + $0x98] sm:$0xff] }
 0xcaa   :  { %v1609_v25 = vpop.xlane.xlu1 %1608 }
 0xcab   :  { %v1611_v27 = vmul.f32 0.03125, %v1609_v25 }
 0xcac   :  { %v1606_v23 = vpop.xlane.xlu0 %1605 }
 0xcad   :  { %v1610_v24 = vmul.f32 0.03125, %v1606_v23  ;;  %v1623_v32 = vmul.f32 %v1611_v27, %v1611_v27  ;;  %v1627_v44 = vsub.f32 %v4620_v12, %v1611_v27 }
 0xcaf   :  { %v1622_v28 = vmul.f32 %v1610_v24, %v1610_v24  ;;  %v1626_v37 = vsub.f32 %v4623_v19, %v1610_v24 }
 0xcb0   :  { %v1616_v26 = vpop.xlane.xlu0 %1615 }
 0xcb1   :  { %v1620_v29 = vmul.f32 0.03125, %v1616_v26 }
 0xcb3   :  { %v1624_v30 = vsub.f32 %v1620_v29, %v1622_v28  ;;  %v3822_v28 = vld [vmem:[%s4996_s2 + $0xb8] ss:$0 sm:$0xff] }
 0xcb4   :  { %v1619_v31 = vpop.xlane.xlu0 %1618 }
 0xcb5   :  { %v1628_v33 = vadd.f32 1e-05, %v1624_v30  ;;  %v1621_v34 = vmul.f32 0.03125, %v1619_v31  ;;  %v3825_v31 = vld [vmem:[%s4997_s1] ss:$0 sm:$0xff] }
 0xcb7   :  { %4296 = vrsqrt.f32 %v1628_v33  ;;  %v1625_v35 = vsub.f32 %v1621_v34, %v1623_v32 }
 0xcb9   :  { %v1629_v36 = vadd.f32 1e-05, %v1625_v35 }
 0xcbb   :  { %4298 = vrsqrt.f32 %v1629_v36 }
 0xcc4   :  { %v4297_v41 = vpop.eup %4296 }
 0xcc5   :  { %v1632_v40 = vmul.f32 %v4297_v41, %v1626_v37 }
 0xcc7   :  { %v1638_v46 = vmul.f32 %v3814_v39, %v1632_v40 }
 0xcc8   :  { %v4299_v48 = vpop.eup %4298 }
 0xcc9   :  { %v1633_v49 = vmul.f32 %v4299_v48, %v1627_v44  ;;  %v1644_v50 = vadd.f32 %v3815_v42, %v1638_v46  ;;  %v2000_v44 = vld [vmem:[%s4995_s3 + $0x38] sm:$0xff]  ;;  %v1999_v46 = vld [vmem:[%s4995_s3 + $0x30] sm:$0xff]  ;;  %v1998_v48 = vld [vmem:[%s4995_s3 + $0x28] sm:$0xff] }
 0xccb   :  { %v1639_v51 = vmul.f32 %v3814_v39, %v1633_v49  ;;  %4095 = vmatprep.mubr.msk.f32.mxu1 %vm21_vm0, %v1644_v50 }
 0xccd   :  { %v1645_v52 = vadd.f32 %v3815_v42, %v1639_v51  ;;  %v2001_v42 = vld [vmem:[%s4995_s3 + $0x40] sm:$0xff] }
 0xcce   :  { %4120 = vmatprep.subr.mxu0 %v2001_v42 }
 0xccf   :  { %4096 = vmatmul.mubr.msk.f32.vlgmr.msra.gmra.mxu1 %vm21_vm0, %v1645_v52 }
 0xcd0   :  { %4110 = vmatpush3.msra.mxu1 %v1851_v15 }
 0xcd1   :  { %4111 = vmatprep.subr.mxu1 %v1850_v16 }
 0xcd2   :  { %4112 = vmatpush3.msra.mxu1 %v1850_v16 }
 0xcd3   :  { %4113 = vmatprep.subr.mxu1 %v1849_v1 }
 0xcd4   :  { %4114 = vmatpush3.msra.mxu1 %v1849_v1 }
 0xcd5   :  { %4115 = vmatprep.subr.mxu1 %v1848_v0 }
 0xcd6   :  { %4116 = vmatpush3.msra.mxu1 %v1848_v0 }
 0xcd7   :  { %4131 = vmatprep.subr.mxu1 %v4348_v38 }
 0xd8f   :  { %v4097_v57 = vpop.f32.mrf.mxu1 }
 0xd90   :  { %v1733_v58 = vadd.f32 %v4097_v57, %v3816_v56 }
 0xd91   :  { %v1727_v59 = vpop.f32.mrf.mxu1 }
 0xd92   :  { %v1739_v60 = vmul.f32 0.044715, %v1733_v58  ;;  %v1728_v61 = vadd.f32 %v3816_v56, %v1727_v59  ;;  %v1737_v13 = vmul.f32 0.5, %v1733_v58 }
 0xd94   :  { %v1741_v62 = vmul.f32 %v1739_v60, %v1733_v58  ;;  %v1738_v63 = vmul.f32 0.044715, %v1728_v61  ;;  %v1736_v10 = vmul.f32 0.5, %v1728_v61 }
 0xd96   :  { %v1743_v2 = vmul.f32 %v1741_v62, %v1733_v58  ;;  %v1740_v3 = vmul.f32 %v1738_v63, %v1728_v61 }
 0xd98   :  { %v1745_v4 = vadd.f32 %v1743_v2, %v1733_v58  ;;  %v1742_v5 = vmul.f32 %v1740_v3, %v1728_v61  ;;  %v3827_v3 = vld [vmem:[%s4996_s2 + $0xc0] ss:$0 sm:$0xff] }
 0xd9a   :  { %v1747_v6 = vmul.f32 0.7978846, %v1745_v4  ;;  %v1744_v7 = vadd.f32 %v1742_v5, %v1728_v61 }
 0xd9c   :  { %4300 = vtanh.f32 %v1747_v6  ;;  %v1746_v47 = vmul.f32 0.7978846, %v1744_v7 }
 0xd9e   :  { %4302 = vtanh.f32 %v1746_v47  ;;  %v3828_v47 = vld [vmem:[%s4996_s2 + $0xc8] ss:$0 sm:$0xff] }
 0xda9   :  { %v4301_v8 = vpop.eup %4300 }
 0xdaa   :  { %v1751_v9 = vadd.f32 1.0, %v4301_v8 }
 0xdab   :  { %v4303_v17 = vpop.eup %4302 }
 0xdac   :  { %v1750_v11 = vadd.f32 1.0, %v4303_v17  ;;  %v1753_v45 = vmul.f32 %v1751_v9, %v1737_v13 }
 0xdae   :  { %v1752_v14 = vmul.f32 %v1750_v11, %v1736_v10  ;;  %v3829_v10 = vld [vmem:[%s4995_s3 + $0x48] ss:$0 sm:$0xff] }
 0xdb0   :  { %4106 = vmatprep.mubr.msk.f32.mxu0 %vm21_vm0, %v1752_v14 }
 0xdb1   :  { %4107 = vmatmul.mubr.msk.f32.vlgmr.msra.gmra.mxu0 %vm21_vm0, %v1753_v45 }
 0xdb2   :  { %4121 = vmatpush3.msra.mxu0 %v2001_v42 }
 0xdb3   :  { %4122 = vmatprep.subr.mxu0 %v2000_v44 }
 0xdb4   :  { %4123 = vmatpush3.msra.mxu0 %v2000_v44 }
 0xdb5   :  { %4124 = vmatprep.subr.mxu0 %v1999_v46 }
 0xdb6   :  { %4125 = vmatpush3.msra.mxu0 %v1999_v46 }
 0xdb7   :  { %4126 = vmatprep.subr.mxu0 %v1998_v48 }
 0xdb8   :  { %4127 = vmatpush3.msra.mxu0 %v1998_v48 }
 0xdb9   :  { %4141 = vmatprep.subr.mxu0 %v4348_v38 }
 0xe71   :  { %v4108_v20 = vpop.f32.mrf.mxu0 }
 0xe72   :  { %v1841_v21 = vadd.f32 %v4108_v20, %v3819_v18 }
 0xe73   :  { %v1835_v22 = vpop.f32.mrf.mxu0 }
 0xe74   :  { %v1836_v23 = vadd.f32 %v3819_v18, %v1835_v22  ;;  %v1845_v24 = vadd.f32 %v1841_v21, %v4620_v12  ;;  %v3826_v12 = vld [vmem:[%s4997_s1 + $0x1] ss:$0 sm:$0xff] }
 0xe76   :  { %v1844_v25 = vadd.f32 %v1836_v23, %v4623_v19  ;;  %v1847_v27 = vmax.f32 %v1845_v24, 0.0 }
 0xe78   :  { %v1846_v26 = vmax.f32 %v1844_v25, 0.0 }
 0xe7a   :  { %4117 = vmatprep.mubr.msk.f32.mxu1 %vm21_vm0, %v1846_v26 }
 0xe7b   :  { %4118 = vmatmul.mubr.msk.f32.vlgmr.msra.gmra.mxu1 %vm21_vm0, %v1847_v27 }
 0xe7c   :  { %4133 = vmatprep.mubr.msk.f32.mxu1 %vm4349_vm1, %v4348_v38 }
 0xf3b   :  { %v4119_v29 = vpop.f32.mrf.mxu1 }
 0xf3c   :  { %v1935_v30 = vadd.f32 %v4119_v29, %v3822_v28 }
 0xf3d   :  { %v1929_v19 = vpop.f32.mrf.mxu1 }
 0xf3e   :  { %v4705_v32 = vadd.f32 %v3826_v12, %v1935_v30  ;;  %v1930_v33 = vadd.f32 %v3822_v28, %v1929_v19 }
 0xf40   :  { %v4707_v34 = vadd.f32 %v3825_v31, %v1930_v33  ;;  %v1959_v35 = vsel %vm21_vm0, %v4705_v32, 0.0  ;;  %v1965_v36 = vmul.f32 %v4705_v32, %v4705_v32 }
 0xf41   :  { %1960 = vadd.xlane.f32.xlu1 %v1959_v35 }
 0xf42   :  { %v1956_v37 = vsel %vm21_vm0, %v4707_v34, 0.0  ;;  %v1964_v41 = vmul.f32 %v4707_v34, %v4707_v34  ;;  %v1969_v39 = vsel %vm21_vm0, %v1965_v36, 0.0 }
 0xf43   :  { %1957 = vadd.xlane.f32.xlu0 %v1956_v37 }
 0xf44   :  { %v1966_v40 = vsel %vm21_vm0, %v1964_v41, 0.0 }
 0xf45   :  { %1970 = vadd.xlane.f32.xlu1 %v1969_v39 }
 0xf47   :  { %1967 = vadd.xlane.f32.xlu0 %v1966_v40 }
 0xfca   :  { %v1961_v49 = vpop.xlane.xlu1 %1960 }
 0xfcb   :  { %v1963_v50 = vmul.f32 0.03125, %v1961_v49 }
 0xfcc   :  { %v1958_v51 = vpop.xlane.xlu0 %1957 }
 0xfcd   :  { %v1962_v52 = vmul.f32 0.03125, %v1958_v51  ;;  %v1975_v53 = vmul.f32 %v1963_v50, %v1963_v50  ;;  %v1979_v62 = vsub.f32 %v4705_v32, %v1963_v50 }
 0xfce   :  { %v1971_v43 = vpop.xlane.xlu1 %1970 }
 0xfcf   :  { %v1973_v54 = vmul.f32 0.03125, %v1971_v43  ;;  %v1974_v56 = vmul.f32 %v1962_v52, %v1962_v52  ;;  %v1978_v2 = vsub.f32 %v4707_v34, %v1962_v52 }
 0xfd0   :  { %v1968_v55 = vpop.xlane.xlu0 %1967 }
 0xfd1   :  { %v1977_v57 = vsub.f32 %v1973_v54, %v1975_v53  ;;  %v1972_v58 = vmul.f32 0.03125, %v1968_v55 }
 0xfd3   :  { %v1981_v59 = vadd.f32 1e-05, %v1977_v57  ;;  %v1976_v60 = vsub.f32 %v1972_v58, %v1974_v56 }
 0xfd5   :  { %4304 = vrsqrt.f32 %v1981_v59  ;;  %v1980_v61 = vadd.f32 1e-05, %v1976_v60 }
 0xfd7   :  { %4306 = vrsqrt.f32 %v1980_v61 }
 0xfe2   :  { %v4305_v63 = vpop.eup %4304 }
 0xfe3   :  { %v1985_v4 = vmul.f32 %v4305_v63, %v1979_v62 }
 0xfe4   :  { %v4307_v5 = vpop.eup %4306 }
 0xfe5   :  { %v1984_v6 = vmul.f32 %v4307_v5, %v1978_v2  ;;  %v1991_v7 = vmul.f32 %v3827_v3, %v1985_v4 }
 0xfe7   :  { %v1990_v8 = vmul.f32 %v3827_v3, %v1984_v6  ;;  %v1997_v9 = vadd.f32 %v3828_v47, %v1991_v7 }
 0xfe9   :  { %v1996_v17 = vadd.f32 %v3828_v47, %v1990_v8 }
 0xfeb   :  { %4128 = vmatprep.mubr.msk.f32.mxu0 %vm21_vm0, %v1996_v17 }
 0xfec   :  { %4129 = vmatmul.mubr.msk.f32.vlgmr.msra.gmra.mxu0 %vm21_vm0, %v1997_v9 }
 0xfed   :  { %4143 = vmatprep.mubr.msk.f32.mxu0 %vm4349_vm1, %v4348_v38 }
0x10ac   :  { %v4130_v11 = vpop.f32.mrf.mxu0 }
0x10ad   :  { %v4747_v13 = vadd.f32 %v4130_v11, %v3829_v10 }
0x10ae   :  { %v2079_v14 = vpop.f32.mrf.mxu0 }
0x10af   :  { %v4749_v45 = vadd.f32 %v3829_v10, %v2079_v14  ;;  %2169 = vrot.lane.b32.xlu1 %v4747_v13, %s4350_s6  ;;  %v4766_v0 = vmul.f32 0.35355338, %v4747_v13 }
0x10b1   :  { %2091 = vrot.lane.b32.xlu0 %v4749_v45, %s4350_s6  ;;  %v4757_v16 = vmul.f32 0.35355338, %v4749_v45 }
0x1121   :  { %v2170_v1 = vpop.permute.xlu1 %2169 }
0x1123   :  { %v2092_v15 = vpop.permute.xlu0 %2091 }
0x1124   :  { %4132 = vmatpush3.xpose.msk.msra.mxu1 %vm160_vm2, %v2092_v15 }
0x1125   :  { %4136 = vmatprep.subr.mxu1 %v4348_v38 }
0x1127   :  { %4134 = vmatmul.mubr.msk.f32.vlgmr.msra.gmra.mxu1 %vm160_vm2, %v4757_v16 }
0x1128   :  { %4137 = vmatpush3.xpose.msk.msra.mxu1 %vm160_vm2, %v2170_v1  ;;  %4138 = vmatprep.mubr.msk.f32.mxu1 %vm4349_vm1, %v4348_v38 }
0x1129   :  { %4146 = vmatprep.subr.mxu1 %v4348_v38 }
0x112b   :  { %4139 = vmatmul.mubr.msk.f32.vlgmr.msra.gmra.mxu1 %vm160_vm2, %v4766_v0 }
0x112c   :  { %4148 = vmatprep.mubr.msk.f32.mxu1 %vm4349_vm1, %v4348_v38 }
0x11e7   :  { %v2164_v18 = vpop.f32.mrf.mxu1 }
0x11e8   :  { %v2246_v20 = vsel %vm160_vm2, %v2164_v18, -inf }
0x11e9   :  { %2247 = vmax.xlane.f32.xlu1 %v2246_v20  ;;  %v4135_v21 = vpop.f32.mrf.mxu1 }
0x11eb   :  { %v2242_v22 = vpop.f32.mrf.mxu1 }
0x11ec   :  { %v2249_v23 = vsel %vm160_vm2, %v2242_v22, -inf }
0x11ed   :  { %2250 = vmax.xlane.f32.xlu0 %v2249_v23  ;;  %v4140_v24 = vpop.f32.mrf.mxu1 }
0x11fa   :  { %2344 = vrot.lane.b32.xlu1 %v4747_v13, %s4351_s7 }
0x11fe   :  { %2422 = vrot.lane.b32.xlu1 %v4749_v45, %s4352_s8 }
0x1202   :  { %2500 = vrot.lane.b32.xlu1 %v4747_v13, %s4352_s8 }
0x1272   :  { %v2248_v25 = vpop.xlane.xlu1 %2247 }
0x1273   :  { %v2252_v26 = vsub.f32 %v2164_v18, %v2248_v25 }
0x1275   :  { %v2254_v27 = vmul.f32 1.442695, %v2252_v26 }
0x1276   :  { %v2345_v28 = vpop.permute.xlu1 %2344  ;;  %v2251_v29 = vpop.xlane.xlu0 %2250 }
0x1277   :  { %4308 = vpow2.f32 %v2254_v27  ;;  %v2253_v12 = vsub.f32 %v2242_v22, %v2251_v29  ;;  %4147 = vmatpush3.msra.mxu1 %v2345_v28 }
0x1278   :  { %4156 = vmatprep.subr.mxu1 %v4348_v38 }
0x1279   :  { %v2256_v30 = vmul.f32 1.442695, %v2253_v12 }
0x127a   :  { %v2423_v36 = vpop.permute.xlu1 %2422 }
0x127b   :  { %4310 = vpow2.f32 %v2256_v30 }
0x127e   :  { %v2501_v37 = vpop.permute.xlu1 %2500 }
0x1284   :  { %v4309_v19 = vpop.eup %4308 }
0x1285   :  { %v2258_v31 = vsel %vm160_vm2, %v4309_v19, 0.0 }
0x1286   :  { %2259 = vadd.xlane.f32.xlu0 %v2258_v31 }
0x1288   :  { %v4311_v33 = vpop.eup %4310 }
0x1289   :  { %v2261_v35 = vsel %vm160_vm2, %v4311_v33, 0.0 }
0x128a   :  { %2262 = vadd.xlane.f32.xlu1 %v2261_v35 }
0x129b   :  { %2498 = vrot.lane.b32.xlu1 %v4766_v0, %s4353_s9 }
0x129c   :  { %2268 = vrot.lane.b32.xlu0 %v4749_v45, %s4351_s7 }
0x12a0   :  { %2420 = vrot.lane.b32.xlu0 %v4757_v16, %s4353_s9 }
0x130f   :  { %v2260_v41 = vpop.xlane.xlu0 %2259 }
0x1310   :  { %4312 = vrcp.f32 %v2260_v41 }
0x1313   :  { %v2263_v39 = vpop.xlane.xlu1 %2262  ;;  %v2269_v40 = vpop.permute.xlu0 %2268 }
0x1314   :  { %4314 = vrcp.f32 %v2263_v39  ;;  %4142 = vmatpush3.msra.mxu0 %v2269_v40 }
0x1315   :  { %4151 = vmatprep.subr.mxu0 %v4348_v38 }
0x1317   :  { %v2421_v49 = vpop.permute.xlu0 %2420  ;;  %v2499_v50 = vpop.permute.xlu1 %2498 }
0x131d   :  { %v4313_v42 = vpop.eup %4312 }
0x131e   :  { %v2266_v44 = vmul.f32 %v4313_v42, %v4309_v19 }
0x1320   :  { %4144 = vmatmul.mubr.msk.f32.vlgmr.msra.gmra.mxu0 %vm160_vm2, %v2266_v44 }
0x1321   :  { %v4315_v46 = vpop.eup %4314  ;;  %4152 = vmatpush3.xpose.msk.msra.mxu0 %vm160_vm2, %v2423_v36  ;;  %4153 = vmatprep.mubr.msk.f32.mxu0 %vm4349_vm1, %v4348_v38 }
0x1322   :  { %v2267_v48 = vmul.f32 %v4315_v46, %v4311_v33  ;;  %4161 = vmatprep.subr.mxu0 %v4348_v38 }
0x1324   :  { %4149 = vmatmul.mubr.msk.f32.vlgmr.msra.gmra.mxu1 %vm160_vm2, %v2267_v48  ;;  %4154 = vmatmul.mubr.msk.f32.vlgmr.msra.gmra.mxu0 %vm160_vm2, %v2421_v49 }
0x1325   :  { %4157 = vmatpush3.xpose.msk.msra.mxu1 %vm160_vm2, %v2501_v37  ;;  %4158 = vmatprep.mubr.msk.f32.mxu1 %vm4349_vm1, %v4348_v38 }
0x1326   :  { %4166 = vmatprep.subr.mxu1 %v4348_v38  ;;  %4163 = vmatprep.mubr.msk.f32.mxu0 %vm4349_vm1, %v4348_v38 }
0x1328   :  { %4159 = vmatmul.mubr.msk.f32.vlgmr.msra.gmra.mxu1 %vm160_vm2, %v2499_v50 }
0x1329   :  { %4168 = vmatprep.mubr.msk.f32.mxu1 %vm4349_vm1, %v4348_v38 }
0x13e0   :  { %v4807_v51 = vpop.f32.mrf.mxu0 }
0x13e2   :  { %v4145_v52 = vpop.f32.mrf.mxu0 }
0x13e4   :  { %v4809_v43 = vpop.f32.mrf.mxu1  ;;  %v2494_v53 = vpop.f32.mrf.mxu0 }
0x13e5   :  { %v2576_v54 = vsel %vm160_vm2, %v2494_v53, -inf }
0x13e6   :  { %2577 = vmax.xlane.f32.xlu0 %v2576_v54  ;;  %v4150_v55 = vpop.f32.mrf.mxu1  ;;  %v4155_v56 = vpop.f32.mrf.mxu0 }
0x13e8   :  { %v2572_v57 = vpop.f32.mrf.mxu1 }
0x13e9   :  { %v2579_v58 = vsel %vm160_vm2, %v2572_v57, -inf }
0x13ea   :  { %2580 = vmax.xlane.f32.xlu1 %v2579_v58  ;;  %v4160_v59 = vpop.f32.mrf.mxu1 }
0x13fb   :  { %2674 = vrot.lane.b32.xlu1 %v4747_v13, %s4354_s10 }
0x13fc   :  { %2598 = vrot.lane.b32.xlu0 %v4749_v45, %s4354_s10 }
0x13ff   :  { %2752 = vrot.lane.b32.xlu1 %v4749_v45, %s4355_s11 }
0x1403   :  { %2830 = vrot.lane.b32.xlu1 %v4747_v13, %s4355_s11 }
0x1407   :  { %2828 = vrot.lane.b32.xlu1 %v4766_v0, %s4356_s12 }
0x146f   :  { %v2578_v60 = vpop.xlane.xlu0 %2577 }
0x1470   :  { %v2582_v61 = vsub.f32 %v2494_v53, %v2578_v60 }
0x1472   :  { %v2584_v62 = vmul.f32 1.442695, %v2582_v61 }
0x1473   :  { %v2599_v63 = vpop.permute.xlu0 %2598  ;;  %v2581_v2 = vpop.xlane.xlu1 %2580 }
0x1474   :  { %4316 = vpow2.f32 %v2584_v62  ;;  %v2583_v3 = vsub.f32 %v2572_v57, %v2581_v2  ;;  %4162 = vmatpush3.msra.mxu0 %v2599_v63 }
0x1475   :  { %4171 = vmatprep.subr.mxu0 %v4348_v38 }
0x1476   :  { %v2586_v4 = vmul.f32 1.442695, %v2583_v3 }
0x1477   :  { %v2675_v5 = vpop.permute.xlu1 %2674 }
0x1478   :  { %4318 = vpow2.f32 %v2586_v4  ;;  %4167 = vmatpush3.msra.mxu1 %v2675_v5 }
0x1479   :  { %4176 = vmatprep.subr.mxu1 %v4348_v38 }
0x147b   :  { %v2753_v10 = vpop.permute.xlu1 %2752 }
0x147f   :  { %v2831_v1 = vpop.permute.xlu1 %2830 }
0x1481   :  { %v4317_v6 = vpop.eup %4316 }
0x1482   :  { %v2588_v7 = vsel %vm160_vm2, %v4317_v6, 0.0 }
0x1483   :  { %2589 = vadd.xlane.f32.xlu0 %v2588_v7  ;;  %v2829_v21 = vpop.permute.xlu1 %2828 }
0x1485   :  { %v4319_v47 = vpop.eup %4318 }
0x1486   :  { %v2591_v8 = vsel %vm160_vm2, %v4319_v47, 0.0 }
0x1487   :  { %2592 = vadd.xlane.f32.xlu0 %v2591_v8 }
0x149d   :  { %2750 = vrot.lane.b32.xlu0 %v4757_v16, %s4356_s12 }
0x150c   :  { %v2590_v17 = vpop.xlane.xlu0 %2589 }
0x150d   :  { %4320 = vrcp.f32 %v2590_v17 }
0x1510   :  { %v2593_v9 = vpop.xlane.xlu0 %2592 }
0x1511   :  { %4322 = vrcp.f32 %v2593_v9 }
0x1514   :  { %v2751_v20 = vpop.permute.xlu0 %2750 }
0x151a   :  { %v4321_v11 = vpop.eup %4320 }
0x151b   :  { %v2596_v14 = vmul.f32 %v4321_v11, %v4317_v6 }
0x151d   :  { %4164 = vmatmul.mubr.msk.f32.vlgmr.msra.gmra.mxu0 %vm160_vm2, %v2596_v14 }
0x151e   :  { %v4323_v15 = vpop.eup %4322  ;;  %4172 = vmatpush3.xpose.msk.msra.mxu0 %vm160_vm2, %v2753_v10  ;;  %4173 = vmatprep.mubr.msk.f32.mxu0 %vm4349_vm1, %v4348_v38 }
0x151f   :  { %v2597_v18 = vmul.f32 %v4323_v15, %v4319_v47  ;;  %4181 = vmatprep.subr.mxu0 %v4348_v38 }
0x1521   :  { %4169 = vmatmul.mubr.msk.f32.vlgmr.msra.gmra.mxu1 %vm160_vm2, %v2597_v18  ;;  %4174 = vmatmul.mubr.msk.f32.vlgmr.msra.gmra.mxu0 %vm160_vm2, %v2751_v20 }
0x1522   :  { %4177 = vmatpush3.xpose.msk.msra.mxu1 %vm160_vm2, %v2831_v1  ;;  %4178 = vmatprep.mubr.msk.f32.mxu1 %vm4349_vm1, %v4348_v38 }
0x1523   :  { %4186 = vmatprep.subr.mxu1 %v4348_v38  ;;  %4183 = vmatprep.mubr.msk.f32.mxu0 %vm4349_vm1, %v4348_v38 }
0x1525   :  { %4179 = vmatmul.mubr.msk.f32.vlgmr.msra.gmra.mxu1 %vm160_vm2, %v2829_v21 }
0x1526   :  { %4188 = vmatprep.mubr.msk.f32.mxu1 %vm4349_vm1, %v4348_v38 }
0x15dd   :  { %v4845_v22 = vpop.f32.mrf.mxu0 }
0x15df   :  { %v4165_v23 = vpop.f32.mrf.mxu0 }
0x15e0   :  { %v3442_v23 = vld [vmem:[%s4996_s2 + $0xe0] sm:$0xff] }
0x15e1   :  { %v4847_v24 = vpop.f32.mrf.mxu1  ;;  %v2824_v25 = vpop.f32.mrf.mxu0 }
0x15e2   :  { %v2906_v26 = vsel %vm160_vm2, %v2824_v25, -inf }
0x15e3   :  { %2907 = vmax.xlane.f32.xlu0 %v2906_v26  ;;  %v4170_v27 = vpop.f32.mrf.mxu1  ;;  %v4175_v28 = vpop.f32.mrf.mxu0 }
0x15e5   :  { %v2902_v29 = vpop.f32.mrf.mxu1 }
0x15e6   :  { %v2909_v12 = vsel %vm160_vm2, %v2902_v29, -inf }
0x15e7   :  { %2910 = vmax.xlane.f32.xlu1 %v2909_v12  ;;  %v4180_v30 = vpop.f32.mrf.mxu1 }
0x15f8   :  { %3004 = vrot.lane.b32.xlu1 %v4747_v13, %s4357_s13 }
0x15f9   :  { %2928 = vrot.lane.b32.xlu0 %v4749_v45, %s4357_s13 }
0x15fc   :  { %3082 = vrot.lane.b32.xlu1 %v4749_v45, %s4358_s14 }
0x1600   :  { %3160 = vrot.lane.b32.xlu1 %v4747_v13, %s4358_s14 }
0x1604   :  { %3158 = vrot.lane.b32.xlu1 %v4766_v0, %s4359_s15 }
0x166c   :  { %v2908_v19 = vpop.xlane.xlu0 %2907 }
0x166d   :  { %v2912_v31 = vsub.f32 %v2824_v25, %v2908_v19  ;;  %v3440_v25 = vld [vmem:[%s4996_s2 + $0xd0] sm:$0xff] }
0x166f   :  { %v2914_v33 = vmul.f32 1.442695, %v2912_v31 }
0x1670   :  { %v2929_v35 = vpop.permute.xlu0 %2928  ;;  %v2911_v36 = vpop.xlane.xlu1 %2910 }
0x1671   :  { %4324 = vpow2.f32 %v2914_v33  ;;  %v2913_v37 = vsub.f32 %v2902_v29, %v2911_v36  ;;  %4182 = vmatpush3.msra.mxu0 %v2929_v35 }
0x1672   :  { %4191 = vmatprep.subr.mxu0 %v4348_v38 }
0x1673   :  { %v2916_v41 = vmul.f32 1.442695, %v2913_v37 }
0x1674   :  { %v3005_v39 = vpop.permute.xlu1 %3004 }
0x1675   :  { %4326 = vpow2.f32 %v2916_v41  ;;  %4187 = vmatpush3.msra.mxu1 %v3005_v39 }
0x1676   :  { %4196 = vmatprep.subr.mxu1 %v4348_v38 }
0x1678   :  { %v3083_v49 = vpop.permute.xlu1 %3082 }
0x167c   :  { %v3161_v54 = vpop.permute.xlu1 %3160 }
0x167e   :  { %v4325_v40 = vpop.eup %4324 }
0x167f   :  { %v2918_v42 = vsel %vm160_vm2, %v4325_v40, 0.0 }
0x1680   :  { %2919 = vadd.xlane.f32.xlu0 %v2918_v42  ;;  %v3159_v56 = vpop.permute.xlu1 %3158 }
0x1682   :  { %v4327_v0 = vpop.eup %4326 }
0x1683   :  { %v2921_v44 = vsel %vm160_vm2, %v4327_v0, 0.0 }
0x1684   :  { %2922 = vadd.xlane.f32.xlu0 %v2921_v44 }
0x169a   :  { %3080 = vrot.lane.b32.xlu0 %v4757_v16, %s4359_s15 }
0x1709   :  { %v2920_v46 = vpop.xlane.xlu0 %2919 }
0x170a   :  { %4328 = vrcp.f32 %v2920_v46 }
0x170d   :  { %v2923_v48 = vpop.xlane.xlu0 %2922 }
0x170e   :  { %4330 = vrcp.f32 %v2923_v48 }
0x1711   :  { %v3081_v16 = vpop.permute.xlu0 %3080 }
0x1717   :  { %v4329_v50 = vpop.eup %4328 }
0x1718   :  { %v2926_v52 = vmul.f32 %v4329_v50, %v4325_v40 }
0x171a   :  { %4184 = vmatmul.mubr.msk.f32.vlgmr.msra.gmra.mxu0 %vm160_vm2, %v2926_v52 }
0x171b   :  { %v4331_v53 = vpop.eup %4330  ;;  %4192 = vmatpush3.xpose.msk.msra.mxu0 %vm160_vm2, %v3083_v49  ;;  %4193 = vmatprep.mubr.msk.f32.mxu0 %vm4349_vm1, %v4348_v38 }
0x171c   :  { %v2927_v55 = vmul.f32 %v4331_v53, %v4327_v0  ;;  %4201 = vmatprep.subr.mxu0 %v4348_v38 }
0x171e   :  { %4189 = vmatmul.mubr.msk.f32.vlgmr.msra.gmra.mxu1 %vm160_vm2, %v2927_v55  ;;  %4194 = vmatmul.mubr.msk.f32.vlgmr.msra.gmra.mxu0 %vm160_vm2, %v3081_v16  ;;  %v3579_v55 = vld [vmem:[%s4996_s2 + $0x120] sm:$0xff]  ;;  %v3578_v16 = vld [vmem:[%s4996_s2 + $0x118] sm:$0xff] }
0x171f   :  { %4197 = vmatpush3.xpose.msk.msra.mxu1 %vm160_vm2, %v3161_v54  ;;  %4198 = vmatprep.mubr.msk.f32.mxu1 %vm4349_vm1, %v4348_v38 }
0x1720   :  { %4206 = vmatprep.subr.mxu1 %v4348_v38  ;;  %4203 = vmatprep.mubr.msk.f32.mxu0 %vm4349_vm1, %v4348_v38 }
0x1722   :  { %4199 = vmatmul.mubr.msk.f32.vlgmr.msra.gmra.mxu1 %vm160_vm2, %v3159_v56  ;;  %v3577_v56 = vld [vmem:[%s4996_s2 + $0x110] sm:$0xff] }
0x1723   :  { %4208 = vmatprep.mubr.msk.f32.mxu1 %vm4349_vm1, %v4348_v38 }
0x17da   :  { %v3000_v57 = vpop.f32.mrf.mxu0 }
0x17dc   :  { %v4185_v58 = vpop.f32.mrf.mxu0 }
0x17de   :  { %v3076_v59 = vpop.f32.mrf.mxu1  ;;  %v3154_v60 = vpop.f32.mrf.mxu0 }
0x17df   :  { %v3236_v61 = vsel %vm160_vm2, %v3154_v60, -inf }
0x17e0   :  { %3237 = vmax.xlane.f32.xlu0 %v3236_v61  ;;  %v4190_v62 = vpop.f32.mrf.mxu1  ;;  %v4195_v63 = vpop.f32.mrf.mxu0 }
0x17e2   :  { %v3232_v2 = vpop.f32.mrf.mxu1 }
0x17e3   :  { %v3239_v3 = vsel %vm160_vm2, %v3232_v2, -inf }
0x17e4   :  { %3240 = vmax.xlane.f32.xlu1 %v3239_v3  ;;  %v4200_v4 = vpop.f32.mrf.mxu1 }
0x17f5   :  { %3334 = vrot.lane.b32.xlu1 %v4747_v13, %s4360_s16 }
0x17f9   :  { %3412 = vrot.lane.b32.xlu1 %v4845_v22, %s4361_s17 }
0x17fd   :  { %3414 = vrot.lane.b32.xlu1 %v4847_v24, %s4361_s17  ;;  %v3441_v24 = vld [vmem:[%s4996_s2 + $0xd8] sm:$0xff] }
0x1801   :  { %3422 = vrot.lane.b32.xlu1 %v3076_v59, %s4362_s18 }
0x1869   :  { %v3238_v38 = vpop.xlane.xlu0 %3237 }
0x186a   :  { %v3242_v5 = vsub.f32 %v3154_v60, %v3238_v38 }
0x186c   :  { %v3244_v6 = vmul.f32 1.442695, %v3242_v5 }
0x186d   :  { %v3241_v7 = vpop.xlane.xlu1 %3240 }
0x186e   :  { %4332 = vpow2.f32 %v3244_v6  ;;  %v3243_v47 = vsub.f32 %v3232_v2, %v3241_v7 }
0x1870   :  { %v3246_v8 = vmul.f32 1.442695, %v3243_v47 }
0x1871   :  { %v3335_v17 = vpop.permute.xlu1 %3334 }
0x1872   :  { %4334 = vpow2.f32 %v3246_v8  ;;  %4207 = vmatpush3.msra.mxu1 %v3335_v17 }
0x1873   :  { %4222 = vmatprep.subr.mxu1 %v3579_v55 }
0x1875   :  { %v3413_v12 = vpop.permute.xlu1 %3412 }
0x1876   :  { %v3434_v31 = vsel %vm160_vm2, %v4807_v51, %v3413_v12  ;;  %v3856_v51 = vld [vmem:[%s4996_s2 + $0xf0] ss:$0 sm:$0xff] }
0x1879   :  { %v3415_v30 = vpop.permute.xlu1 %3414 }
0x187a   :  { %v3435_v41 = vsel %vm160_vm2, %v4809_v43, %v3415_v30 }
0x187b   :  { %v4333_v9 = vpop.eup %4332 }
0x187c   :  { %v3248_v13 = vsel %vm160_vm2, %v4333_v9, 0.0 }
0x187d   :  { %3249 = vadd.xlane.f32.xlu0 %v3248_v13  ;;  %v3423_v33 = vpop.permute.xlu1 %3422 }
0x187e   :  { %v3437_v39 = vsel %vm1504_vm4, %v3435_v41, %v3423_v33 }
0x187f   :  { %v4335_v10 = vpop.eup %4334 }
0x1880   :  { %v3251_v11 = vsel %vm160_vm2, %v4335_v10, 0.0 }
0x1881   :  { %3252 = vadd.xlane.f32.xlu0 %v3251_v11 }
0x1897   :  { %3258 = vrot.lane.b32.xlu0 %v4749_v45, %s4360_s16  ;;  %v3443_v45 = vld [vmem:[%s4996_s2 + $0xe8] sm:$0xff] }
0x189b   :  { %3420 = vrot.lane.b32.xlu0 %v3000_v57, %s4362_s18  ;;  %v3576_v57 = vld [vmem:[%s4996_s2 + $0x108] sm:$0xff] }
0x1906   :  { %v3250_v14 = vpop.xlane.xlu0 %3249 }
0x1907   :  { %4336 = vrcp.f32 %v3250_v14 }
0x190a   :  { %v3253_v15 = vpop.xlane.xlu0 %3252 }
0x190b   :  { %4338 = vrcp.f32 %v3253_v15 }
0x190e   :  { %v3259_v1 = vpop.permute.xlu0 %3258 }
0x190f   :  { %4202 = vmatpush3.msra.mxu0 %v3259_v1 }
0x1910   :  { %4211 = vmatprep.subr.mxu0 %v3443_v45 }
0x1912   :  { %v3421_v19 = vpop.permute.xlu0 %3420 }
0x1913   :  { %v3436_v35 = vsel %vm1504_vm4, %v3434_v31, %v3421_v19 }
0x1914   :  { %v4337_v18 = vpop.eup %4336 }
0x1915   :  { %v3256_v20 = vmul.f32 %v4337_v18, %v4333_v9  ;;  %v3859_v9 = vld [vmem:[%s4996_s2 + $0xf8] ss:$0 sm:$0xff] }
0x1917   :  { %4204 = vmatmul.mubr.msk.f32.vlgmr.msra.gmra.mxu0 %vm160_vm2, %v3256_v20 }
0x1918   :  { %v4339_v21 = vpop.eup %4338  ;;  %4212 = vmatpush3.msra.mxu0 %v3443_v45  ;;  %v3686_v45 = vld [vmem:[%s4996_s2 + $0x140] sm:$0xff] }
0x1919   :  { %v3257_v22 = vmul.f32 %v4339_v21, %v4335_v10  ;;  %4213 = vmatprep.subr.mxu0 %v3442_v23  ;;  %v3860_v10 = vld [vmem:[%s4996_s2 + $0x100] ss:$0 sm:$0xff] }
0x191a   :  { %4214 = vmatpush3.msra.mxu0 %v3442_v23  ;;  %v3685_v23 = vld [vmem:[%s4996_s2 + $0x138] sm:$0xff] }
0x191b   :  { %4209 = vmatmul.mubr.msk.f32.vlgmr.msra.gmra.mxu1 %vm160_vm2, %v3257_v22  ;;  %4215 = vmatprep.subr.mxu0 %v3441_v24  ;;  %v3687_v22 = vld [vmem:[%s4996_s2 + $0x148] sm:$0xff] }
0x191c   :  { %4216 = vmatpush3.msra.mxu0 %v3441_v24  ;;  %4223 = vmatpush3.msra.mxu1 %v3579_v55  ;;  %v3684_v24 = vld [vmem:[%s4996_s2 + $0x130] sm:$0xff] }
0x191d   :  { %4217 = vmatprep.subr.mxu0 %v3440_v25  ;;  %4224 = vmatprep.subr.mxu1 %v3578_v16 }
0x191e   :  { %4218 = vmatpush3.msra.mxu0 %v3440_v25  ;;  %4225 = vmatpush3.msra.mxu1 %v3578_v16  ;;  %v3861_v25 = vld [vmem:[%s4996_s2 + $0x128] ss:$0 sm:$0xff] }
0x191f   :  { %4226 = vmatprep.subr.mxu1 %v3577_v56  ;;  %4233 = vmatprep.subr.mxu0 %v3687_v22 }
0x1920   :  { %4227 = vmatpush3.msra.mxu1 %v3577_v56 }
0x1921   :  { %4228 = vmatprep.subr.mxu1 %v3576_v57 }
0x1922   :  { %4229 = vmatpush3.msra.mxu1 %v3576_v57 }
0x19d7   :  { %v3330_v26 = vpop.f32.mrf.mxu0 }
0x19d8   :  { %3428 = vrot.lane.b32.xlu0 %v3330_v26, %s4363_s26 }
0x19d9   :  { %v4205_v27 = vpop.f32.mrf.mxu0 }
0x19db   :  { %v3406_v28 = vpop.f32.mrf.mxu1 }
0x19dc   :  { %3430 = vrot.lane.b32.xlu1 %v3406_v28, %s4363_s26 }
0x19dd   :  { %v4210_v29 = vpop.f32.mrf.mxu1 }
0x1a4a   :  { %v3429_v36 = vpop.permute.xlu0 %3428 }
0x1a4b   :  { %v3438_v37 = vsel %vm1507_vm3, %v3436_v35, %v3429_v36 }
0x1a4c   :  { %4219 = vmatprep.mubr.msk.f32.mxu0 %vm21_vm0, %v3438_v37 }
0x1a4e   :  { %v3431_v40 = vpop.permute.xlu1 %3430 }
0x1a4f   :  { %v3439_v42 = vsel %vm1507_vm3, %v3437_v39, %v3431_v40 }
0x1a50   :  { %4220 = vmatmul.mubr.msk.f32.vlgmr.msra.gmra.mxu0 %vm21_vm0, %v3439_v42 }
0x1a51   :  { %4234 = vmatpush3.msra.mxu0 %v3687_v22 }
0x1a52   :  { %4235 = vmatprep.subr.mxu0 %v3686_v45 }
0x1a53   :  { %4236 = vmatpush3.msra.mxu0 %v3686_v45 }
0x1a54   :  { %4237 = vmatprep.subr.mxu0 %v3685_v23 }
0x1a55   :  { %4238 = vmatpush3.msra.mxu0 %v3685_v23 }
0x1a56   :  { %4239 = vmatprep.subr.mxu0 %v3684_v24 }
0x1a57   :  { %4240 = vmatpush3.msra.mxu0 %v3684_v24 }
0x1b10   :  { %v4221_v0 = vpop.f32.mrf.mxu0 }
0x1b11   :  { %v3527_v44 = vadd.f32 %v4221_v0, %v3856_v51 }
0x1b12   :  { %v3521_v46 = vpop.f32.mrf.mxu0 }
0x1b13   :  { %v4927_v48 = vadd.f32 %v3527_v44, %v4705_v32  ;;  %v3522_v49 = vadd.f32 %v3856_v51, %v3521_v46 }
0x1b15   :  { %v4930_v43 = vadd.f32 %v3522_v49, %v4707_v34  ;;  %v3537_v50 = vsel %vm21_vm0, %v4927_v48, 0.0  ;;  %v3543_v32 = vmul.f32 %v4927_v48, %v4927_v48 }
0x1b16   :  { %3538 = vadd.xlane.f32.xlu1 %v3537_v50 }
0x1b17   :  { %v3534_v52 = vsel %vm21_vm0, %v4930_v43, 0.0  ;;  %v3542_v53 = vmul.f32 %v4930_v43, %v4930_v43  ;;  %v3547_v34 = vsel %vm21_vm0, %v3543_v32, 0.0 }
0x1b18   :  { %3535 = vadd.xlane.f32.xlu0 %v3534_v52  ;;  %v3864_v52 = vld [vmem:[%s4996_s2 + $0x150] ss:$0 sm:$0xff] }
0x1b19   :  { %v3544_v54 = vsel %vm21_vm0, %v3542_v53, 0.0 }
0x1b1c   :  { %3545 = vadd.xlane.f32.xlu0 %v3544_v54 }
0x1b20   :  { %3548 = vadd.xlane.f32.xlu0 %v3547_v34 }
0x1b9f   :  { %v3539_v60 = vpop.xlane.xlu1 %3538 }
0x1ba0   :  { %v3541_v62 = vmul.f32 0.03125, %v3539_v60 }
0x1ba1   :  { %v3536_v58 = vpop.xlane.xlu0 %3535 }
0x1ba2   :  { %v3540_v59 = vmul.f32 0.03125, %v3536_v58  ;;  %v3553_v38 = vmul.f32 %v3541_v62, %v3541_v62  ;;  %v3557_v11 = vsub.f32 %v4927_v48, %v3541_v62 }
0x1ba4   :  { %v3552_v63 = vmul.f32 %v3540_v59, %v3540_v59  ;;  %v3556_v8 = vsub.f32 %v4930_v43, %v3540_v59 }
0x1ba5   :  { %v3546_v61 = vpop.xlane.xlu0 %3545 }
0x1ba6   :  { %v3550_v2 = vmul.f32 0.03125, %v3546_v61 }
0x1ba8   :  { %v3554_v3 = vsub.f32 %v3550_v2, %v3552_v63 }
0x1ba9   :  { %v3549_v4 = vpop.xlane.xlu0 %3548 }
0x1baa   :  { %v3558_v5 = vadd.f32 1e-05, %v3554_v3  ;;  %v3551_v6 = vmul.f32 0.03125, %v3549_v4 }
0x1bac   :  { %4340 = vrsqrt.f32 %v3558_v5  ;;  %v3555_v7 = vsub.f32 %v3551_v6, %v3553_v38 }
0x1bae   :  { %v3559_v47 = vadd.f32 1e-05, %v3555_v7 }
0x1bb0   :  { %4342 = vrsqrt.f32 %v3559_v47 }
0x1bb9   :  { %v4341_v17 = vpop.eup %4340 }
0x1bba   :  { %v3562_v13 = vmul.f32 %v4341_v17, %v3556_v8 }
0x1bbc   :  { %v3568_v14 = vmul.f32 %v3859_v9, %v3562_v13 }
0x1bbd   :  { %v4343_v15 = vpop.eup %4342 }
0x1bbe   :  { %v3563_v1 = vmul.f32 %v4343_v15, %v3557_v11  ;;  %v3574_v18 = vadd.f32 %v3860_v10, %v3568_v14 }
0x1bc0   :  { %v3569_v20 = vmul.f32 %v3859_v9, %v3563_v1  ;;  %4230 = vmatprep.mubr.msk.f32.mxu1 %vm21_vm0, %v3574_v18 }
0x1bc2   :  { %v3575_v21 = vadd.f32 %v3860_v10, %v3569_v20 }
0x1bc4   :  { %4231 = vmatmul.mubr.msk.f32.vlgmr.msra.gmra.mxu1 %vm21_vm0, %v3575_v21 }
0x1c84   :  { %v4232_v26 = vpop.f32.mrf.mxu1 }
0x1c85   :  { %v3663_v27 = vadd.f32 %v4232_v26, %v3861_v25 }
0x1c86   :  { %v3657_v28 = vpop.f32.mrf.mxu1 }
0x1c87   :  { %v3669_v29 = vmul.f32 0.044715, %v3663_v27  ;;  %v3658_v12 = vadd.f32 %v3861_v25, %v3657_v28  ;;  %v3667_v46 = vmul.f32 0.5, %v3663_v27 }
0x1c89   :  { %v3671_v30 = vmul.f32 %v3669_v29, %v3663_v27  ;;  %v3668_v19 = vmul.f32 0.044715, %v3658_v12  ;;  %v3666_v0 = vmul.f32 0.5, %v3658_v12 }
0x1c8b   :  { %v3673_v31 = vmul.f32 %v3671_v30, %v3663_v27  ;;  %v3670_v33 = vmul.f32 %v3668_v19, %v3658_v12 }
0x1c8d   :  { %v3675_v35 = vadd.f32 %v3673_v31, %v3663_v27  ;;  %v3672_v36 = vmul.f32 %v3670_v33, %v3658_v12 }
0x1c8f   :  { %v3677_v37 = vmul.f32 0.7978846, %v3675_v35  ;;  %v3674_v41 = vadd.f32 %v3672_v36, %v3658_v12 }
0x1c91   :  { %4344 = vtanh.f32 %v3677_v37  ;;  %v3676_v39 = vmul.f32 0.7978846, %v3674_v41 }
0x1c93   :  { %4346 = vtanh.f32 %v3676_v39 }
0x1c9e   :  { %v4345_v40 = vpop.eup %4344 }
0x1c9f   :  { %v3681_v51 = vadd.f32 1.0, %v4345_v40 }
0x1ca0   :  { %v4347_v42 = vpop.eup %4346 }
0x1ca1   :  { %v3680_v44 = vadd.f32 1.0, %v4347_v42  ;;  %v3683_v50 = vmul.f32 %v3681_v51, %v3667_v46 }
0x1ca3   :  { %v3682_v49 = vmul.f32 %v3680_v44, %v3666_v0 }
0x1ca5   :  { %4241 = vmatprep.mubr.msk.f32.mxu0 %vm21_vm0, %v3682_v49 }
0x1ca6   :  { %4242 = vmatmul.mubr.msk.f32.vlgmr.msra.gmra.mxu0 %vm21_vm0, %v3683_v50 }
0x1d66   :  { %v4243_v53 = vpop.f32.mrf.mxu0 }
0x1d67   :  { %v3771_v54 = vadd.f32 %v4243_v53, %v3864_v52 }
0x1d68   :  { %v3765_v32 = vpop.f32.mrf.mxu0 }
0x1d69   :  { %v3775_v34 = vadd.f32 %v3771_v54, %v4927_v48  ;;  %v3766_v55 = vadd.f32 %v3864_v52, %v3765_v32 }
0x1d6b   :  { %3777 = vst.msk [vmem:[%s4998_s4 + $0x8] sm:$0xff] %vm21_vm0, %v3775_v34  ;;  %v3774_v16 = vadd.f32 %v3766_v55, %v4930_v43 }
0x1d6d   :  { %3776 = vst.msk [vmem:[%s4998_s4] sm:$0xff] %vm21_vm0, %v3774_v16 }

</bundles_post_ra>
